<compile_context>
chip_gen: v7x
topology: tpu7x:2x2x1
jax: 0.10.0
libtpu: 0.0.40
codegen_flags: <defaults>
</compile_context>

<pallas_src>
import math

import jax
import jax.numpy as jnp
from jax import lax
from jax.experimental import pallas as pl
from jax.experimental.pallas import tpu as pltpu

N_CLS, SEQ, WIDTH, HEADS, LAYERS, EMBED = 2, 8, 32, 4, 2, 16
HEAD_DIM = WIDTH // HEADS
HIDDEN = 4 * WIDTH
T_FLAT = N_CLS * HEADS * SEQ          # flattened (class, head, position) rows
LN_EPS = 1e-5
NEG_BIG = -1e9                        # stands in for float('-inf') in the mask
DTYPE = jnp.float32
MM_DTYPE = jnp.float32                # TODO(synk): jnp.bfloat16 at real sizes


# ------------------------------ in-kernel helpers ----------------------------

def _layernorm(x, gamma, beta):
    mean = jnp.mean(x, axis=-1, keepdims=True)
    var = jnp.mean(jnp.square(x - mean), axis=-1, keepdims=True)
    return (x - mean) * lax.rsqrt(var + LN_EPS) * gamma + beta


def _mm(a, b):
    return jnp.dot(a.astype(MM_DTYPE), b.astype(MM_DTYPE),
                   preferred_element_type=jnp.float32)


def _mm_nt(a, b):                                        # a @ b.T, no explicit .T
    return lax.dot_general(a.astype(MM_DTYPE), b.astype(MM_DTYPE),
                           (((1,), (1,)), ((), ())),
                           preferred_element_type=jnp.float32)


# ------------------------------ Pallas kernel --------------------------------

def text_encoder_kernel(eot_ref,                                  # SMEM (N,)
                        prompts_ref, pos_ref, mask_ref,
                        g1_ref, b1_ref, wqkv_ref, bqkv_ref, wo_ref, bo_ref,
                        g2_ref, b2_ref, w1_ref, b1m_ref, w2_ref, b2m_ref,
                        gf_ref, bf_ref, proj_ref,
                        o_ref,
                        x_scratch):
    l = pl.program_id(0)
    scale = 1.0 / math.sqrt(HEAD_DIM)

    # Initialize the layer-carried activation on the first layer step.
    @pl.when(l == 0)
    def _():
        x_scratch[...] = (prompts_ref[...] + pos_ref[...]).reshape(
            N_CLS * SEQ, WIDTH)

    x = x_scratch[...]                                            # (N*L, D)

    # ----------------------------- attention block ---------------------------
    xn = _layernorm(x, g1_ref[...], b1_ref[...])                  # (N*L, D)
    qkv = _mm(xn, wqkv_ref[...]) + bqkv_ref[...]                  # (N*L, 3D)
    q = qkv[:, :WIDTH]
    k = qkv[:, WIDTH:2 * WIDTH]
    v = qkv[:, 2 * WIDTH:]

    def to_rows(t):   # (N*L, H*Hd) -> (H*N*L, Hd): heads stacked into rows
        return jnp.concatenate(
            [t[:, hh * HEAD_DIM:(hh + 1) * HEAD_DIM] for hh in range(HEADS)],
            axis=0)

    qf = to_rows(q) * scale                                       # (64, 8)
    kf = to_rows(k)
    vf = to_rows(v)

    # Single block-diagonal attention: one (64,8)@(8,64) and one (64,64)@(64,8)
    # MXU op; mask_ref carries causal + head/class-block structure (hoisted to
    # a host constant, fetched once and resident across the whole grid).
    s = _mm_nt(qf, kf) + mask_ref[...]                            # (64, 64)
    m = jnp.max(s, axis=-1, keepdims=True)
    e = jnp.exp(s - m)
    p = e * pl.reciprocal(jnp.sum(e, axis=-1, keepdims=True), approx=True)
    o = _mm(p, vf)                                                # (64, 8)

    # Concat-then-project: interleave heads back to (N*L, H*Hd) feature order,
    # then a single (16,32)@(32,32) output projection.
    oc = jnp.concatenate(
        [o[hh * N_CLS * SEQ:(hh + 1) * N_CLS * SEQ, :] for hh in range(HEADS)],
        axis=1)                                                   # (N*L, D)
    x = x + _mm(oc, wo_ref[...]) + bo_ref[...]

    # ------------------------------- MLP block --------------------------------
    xn2 = _layernorm(x, g2_ref[...], b2_ref[...])
    hdn = _mm(xn2, w1_ref[...]) + b1m_ref[...]
    hdn = hdn * jax.nn.sigmoid(1.702 * hdn)                       # QuickGELU
    x = x + _mm(hdn, w2_ref[...]) + b2m_ref[...]

    x_scratch[...] = x                                            # carry to next layer

    # --------------- ln_final + EOT one-hot gather + projection ---------------
    @pl.when(l == pl.num_programs(0) - 1)
    def _():
        row = lax.broadcasted_iota(jnp.int32, (N_CLS, N_CLS * SEQ), 0)
        col = lax.broadcasted_iota(jnp.int32, (N_CLS, N_CLS * SEQ), 1)
        onehot = jnp.zeros((N_CLS, N_CLS * SEQ), jnp.float32)
        for n in range(N_CLS):
            tgt = n * SEQ + eot_ref[n]                            # SMEM scalar
            onehot = jnp.where((row == n) & (col == tgt), 1.0, onehot)
        xe = jnp.dot(onehot, x, preferred_element_type=jnp.float32)  # (N, D)
        xe = _layernorm(xe, gf_ref[...], bf_ref[...])
        o_ref[...] = _mm(xe, proj_ref[...]).astype(o_ref.dtype)   # (N, E)


# ------------------------------ host-side wrapper ----------------------------

def _rep(shape):
    nd = len(shape)
    return pl.BlockSpec(shape, lambda l, eot, _nd=nd: (0,) * _nd)


def _per_layer(shape):
    nd = len(shape)
    return pl.BlockSpec((None,) + tuple(shape),
                        lambda l, eot, _nd=nd: (l,) + (0,) * _nd)


def _build_attn_mask():
    """Causal + head/class block-diagonal mask for the flattened attention."""
    r = jnp.arange(T_FLAT)
    same_block = (r[:, None] // SEQ) == (r[None, :] // SEQ)
    causal_ok = (r[None, :] % SEQ) <= (r[:, None] % SEQ)
    return jnp.where(same_block & causal_ok, 0.0, NEG_BIG).astype(DTYPE)


def _prepare_kernel_params(params):
    """Stack per-layer weights along a leading LAYERS axis (single copy each —
    no tiling by class count), pre-transposed for x @ W layout."""
    layers = params["layers"]
    stk = lambda f: jnp.stack([f(lp) for lp in layers], axis=0)
    return {
        "pos": params["pos"].astype(DTYPE),
        "g1": stk(lambda lp: lp["g1"]), "b1": stk(lambda lp: lp["b1"]),
        "wqkv": stk(lambda lp: lp["wqkv"].T),           # (L, D, 3D)
        "bqkv": stk(lambda lp: lp["bqkv"]),             # (L, 1, 3D)
        "wo": stk(lambda lp: lp["wo"].T),               # (L, D, D)
        "bo": stk(lambda lp: lp["bo"]),
        "g2": stk(lambda lp: lp["g2"]), "b2": stk(lambda lp: lp["b2"]),
        "w1": stk(lambda lp: lp["w1"].T),               # (L, D, 4D)
        "b1m": stk(lambda lp: lp["b1_mlp"]),
        "w2": stk(lambda lp: lp["w2"].T),               # (L, 4D, D)
        "b2m": stk(lambda lp: lp["b2_mlp"]),
        "gf": params["gf"], "bf": params["bf"], "proj": params["proj"],
    }


def text_encoder_forward(prompts, tokenized_prompts, params):
    kp = _prepare_kernel_params(params)
    attn_mask = _build_attn_mask()
    # argmax over token ids (EOT has the largest id) — host-side glue feeding
    # the scalar-prefetch operand.
    eot = jnp.argmax(tokenized_prompts, axis=-1).astype(jnp.int32)

    inputs = (prompts.astype(DTYPE), kp["pos"], attn_mask,
              kp["g1"], kp["b1"], kp["wqkv"], kp["bqkv"], kp["wo"], kp["bo"],
              kp["g2"], kp["b2"], kp["w1"], kp["b1m"], kp["w2"], kp["b2m"],
              kp["gf"], kp["bf"], kp["proj"])

    in_specs = [
        _rep((N_CLS, SEQ, WIDTH)),                       # prompts (layer 0 only)
        _rep((SEQ, WIDTH)),                              # positional embedding
        _rep((T_FLAT, T_FLAT)),                          # attention mask
        _per_layer((1, WIDTH)), _per_layer((1, WIDTH)),  # ln1 gamma/beta
        _per_layer((WIDTH, 3 * WIDTH)), _per_layer((1, 3 * WIDTH)),  # Wqkv, bqkv
        _per_layer((WIDTH, WIDTH)), _per_layer((1, WIDTH)),          # Wo, bo
        _per_layer((1, WIDTH)), _per_layer((1, WIDTH)),  # ln2 gamma/beta
        _per_layer((WIDTH, HIDDEN)), _per_layer((1, HIDDEN)),        # W1, b1
        _per_layer((HIDDEN, WIDTH)), _per_layer((1, WIDTH)),         # W2, b2
        _rep((1, WIDTH)), _rep((1, WIDTH)),              # ln_final gamma/beta
        _rep((WIDTH, EMBED)),                            # text_projection
    ]

    grid_spec = pltpu.PrefetchScalarGridSpec(
        num_scalar_prefetch=1,
        grid=(LAYERS,),
        in_specs=in_specs,
        out_specs=pl.BlockSpec((N_CLS, EMBED), lambda l, eot: (0, 0)),
        scratch_shapes=[pltpu.VMEM((N_CLS * SEQ, WIDTH), jnp.float32)],
    )
    return pl.pallas_call(
        text_encoder_kernel,
        out_shape=jax.ShapeDtypeStruct((N_CLS, EMBED), DTYPE),
        grid_spec=grid_spec,
        compiler_params=pltpu.CompilerParams(
            dimension_semantics=("arbitrary",),
            vmem_limit_bytes=32 * 1024 * 1024),
    )(eot, *inputs)


# ---------------------------- deterministic params ---------------------------

def init_params(key):
    keys = jax.random.split(key, 2 + LAYERS)
    p = {
        "pos": 0.01 * jax.random.normal(keys[0], (SEQ, WIDTH), DTYPE),
        "gf": jnp.ones((1, WIDTH), DTYPE),
        "bf": jnp.zeros((1, WIDTH), DTYPE),
        "proj": 0.02 * jax.random.normal(keys[1], (WIDTH, EMBED), DTYPE),
        "layers": [],
    }
    for l in range(LAYERS):
        k = jax.random.split(keys[2 + l], 6)
        p["layers"].append({
            "g1": jnp.ones((1, WIDTH), DTYPE),
            "b1": jnp.zeros((1, WIDTH), DTYPE),
            "wqkv": 0.05 * jax.random.normal(k[0], (3 * WIDTH, WIDTH), DTYPE),
            "bqkv": 0.01 * jax.random.normal(k[1], (1, 3 * WIDTH), DTYPE),
            "wo": 0.05 * jax.random.normal(k[2], (WIDTH, WIDTH), DTYPE),
            "bo": 0.01 * jax.random.normal(k[3], (1, WIDTH), DTYPE),
            "g2": jnp.ones((1, WIDTH), DTYPE),
            "b2": jnp.zeros((1, WIDTH), DTYPE),
            "w1": 0.05 * jax.random.normal(k[4], (4 * WIDTH, WIDTH), DTYPE),
            "b1_mlp": jnp.zeros((1, 4 * WIDTH), DTYPE),
            "w2": 0.05 * jax.random.normal(k[5], (WIDTH, 4 * WIDTH), DTYPE),
            "b2_mlp": jnp.zeros((1, WIDTH), DTYPE),
        })
    return p


# ------------------------------ pure-JAX reference ---------------------------

def ref_forward(prompts, tokenized_prompts, params):
    def ln(x, g, b):
        m = jnp.mean(x, axis=-1, keepdims=True)
        v = jnp.mean(jnp.square(x - m), axis=-1, keepdims=True)
        return (x - m) * lax.rsqrt(v + LN_EPS) * g + b

    x = prompts + params["pos"][None]
    N, L, D = x.shape
    causal = jnp.where(jnp.arange(L)[None, :] > jnp.arange(L)[:, None],
                       NEG_BIG, 0.0)
    scale = 1.0 / math.sqrt(HEAD_DIM)
    for lp in params["layers"]:
        xn = ln(x, lp["g1"][0], lp["b1"][0])
        qkv = xn @ lp["wqkv"].T + lp["bqkv"][0]
        q, k, v = jnp.split(qkv, 3, axis=-1)
        q = q.reshape(N, L, HEADS, HEAD_DIM)
        k = k.reshape(N, L, HEADS, HEAD_DIM)
        v = v.reshape(N, L, HEADS, HEAD_DIM)
        s = jnp.einsum("nqhd,nkhd->nhqk", q, k) * scale + causal
        p = jax.nn.softmax(s, axis=-1)
        o = jnp.einsum("nhqk,nkhd->nqhd", p, v).reshape(N, L, D)
        x = x + o @ lp["wo"].T + lp["bo"][0]
        xn = ln(x, lp["g2"][0], lp["b2"][0])
        h = xn @ lp["w1"].T + lp["b1_mlp"][0]
        h = h * jax.nn.sigmoid(1.702 * h)
        x = x + h @ lp["w2"].T + lp["b2_mlp"][0]
    x = ln(x, params["gf"][0], params["bf"][0])
    eot = jnp.argmax(tokenized_prompts, axis=-1)
    return x[jnp.arange(N), eot] @ params["proj"]


if __name__ == "__main__":
    key = jax.random.PRNGKey(0)
    kp, kd = jax.random.split(key)
    params = init_params(kp)
    prompts = jax.random.normal(kd, (N_CLS, SEQ, WIDTH), DTYPE)
    # synthetic tokenized prompts; EOT id (49407) is the largest -> argmax = EOT position
    tokenized = jnp.array(
        [[49406, 320, 1125, 539, 2368, 49407, 0, 0],
         [49406, 320, 1125, 539, 1929, 9573, 1034, 49407]], dtype=jnp.int32)

    out = text_encoder_forward(prompts, tokenized, params)
    out = jax.block_until_ready(out)

    ref = ref_forward(prompts, tokenized, params)
    assert out.shape == (N_CLS, EMBED)
    err = float(jnp.max(jnp.abs(out - ref)))
    assert err < 1e-3, f"mismatch vs pure-JAX reference: {err}"
    print("KERNEL_OK")
</pallas_src>

<mosaic_0001>
module attributes {stable_mosaic.version = 11 : i64} {
  func.func @text_encoder_kernel(%arg0: i32, %arg1: memref<2xi32, #tpu.memory_space<smem>>, %arg2: memref<2x8x32xf32, #tpu.memory_space<vmem>>, %arg3: memref<8x32xf32, #tpu.memory_space<vmem>>, %arg4: memref<64x64xf32, #tpu.memory_space<vmem>>, %arg5: memref<1x1x32xf32, #tpu.memory_space<vmem>>, %arg6: memref<1x1x32xf32, #tpu.memory_space<vmem>>, %arg7: memref<1x32x96xf32, #tpu.memory_space<vmem>>, %arg8: memref<1x1x96xf32, #tpu.memory_space<vmem>>, %arg9: memref<1x32x32xf32, #tpu.memory_space<vmem>>, %arg10: memref<1x1x32xf32, #tpu.memory_space<vmem>>, %arg11: memref<1x1x32xf32, #tpu.memory_space<vmem>>, %arg12: memref<1x1x32xf32, #tpu.memory_space<vmem>>, %arg13: memref<1x32x128xf32, #tpu.memory_space<vmem>>, %arg14: memref<1x1x128xf32, #tpu.memory_space<vmem>>, %arg15: memref<1x128x32xf32, #tpu.memory_space<vmem>>, %arg16: memref<1x1x32xf32, #tpu.memory_space<vmem>>, %arg17: memref<1x32xf32, #tpu.memory_space<vmem>>, %arg18: memref<1x32xf32, #tpu.memory_space<vmem>>, %arg19: memref<32x16xf32, #tpu.memory_space<vmem>>, %arg20: memref<2x16xf32, #tpu.memory_space<vmem>>, %arg21: memref<16x32xf32, #tpu.memory_space<vmem>>) attributes {dimension_semantics = [#tpu.dimension_semantics<arbitrary>], iteration_bounds = array<i64: 2>, scalar_prefetch = 1 : i64, scratch_operands = 1 : i64, tpu.core_type = #tpu.core_type<tc>, window_params = [{pipeline_mode = #tpu.pipeline_mode<synchronous>, transform_indices = @transform_0, window_bounds = array<i64: 2, 8, 32>}, {pipeline_mode = #tpu.pipeline_mode<synchronous>, transform_indices = @transform_1, window_bounds = array<i64: 8, 32>}, {pipeline_mode = #tpu.pipeline_mode<synchronous>, transform_indices = @transform_2, window_bounds = array<i64: 64, 64>}, {transform_indices = @transform_3, window_bounds = array<i64: 1, 1, 32>}, {transform_indices = @transform_4, window_bounds = array<i64: 1, 1, 32>}, {transform_indices = @transform_5, window_bounds = array<i64: 1, 32, 96>}, {transform_indices = @transform_6, window_bounds = array<i64: 1, 1, 96>}, {transform_indices = @transform_7, window_bounds = array<i64: 1, 32, 32>}, {transform_indices = @transform_8, window_bounds = array<i64: 1, 1, 32>}, {transform_indices = @transform_9, window_bounds = array<i64: 1, 1, 32>}, {transform_indices = @transform_10, window_bounds = array<i64: 1, 1, 32>}, {transform_indices = @transform_11, window_bounds = array<i64: 1, 32, 128>}, {transform_indices = @transform_12, window_bounds = array<i64: 1, 1, 128>}, {transform_indices = @transform_13, window_bounds = array<i64: 1, 128, 32>}, {transform_indices = @transform_14, window_bounds = array<i64: 1, 1, 32>}, {pipeline_mode = #tpu.pipeline_mode<synchronous>, transform_indices = @transform_15, window_bounds = array<i64: 1, 32>}, {pipeline_mode = #tpu.pipeline_mode<synchronous>, transform_indices = @transform_16, window_bounds = array<i64: 1, 32>}, {pipeline_mode = #tpu.pipeline_mode<synchronous>, transform_indices = @transform_17, window_bounds = array<i64: 32, 16>}, {pipeline_mode = #tpu.pipeline_mode<synchronous>, transform_indices = @transform_18, window_bounds = array<i64: 2, 16>}]} {
    %c0_i32 = arith.constant 0 : i32
    %0 = arith.cmpi eq, %arg0, %c0_i32 : i32
    %1 = arith.extui %0 : i1 to i32
    %c0_i32_0 = arith.constant 0 : i32
    %2 = arith.cmpi ne, %1, %c0_i32_0 : i32
    scf.if %2 {
      %c0_63 = arith.constant 0 : index
      %c0_64 = arith.constant 0 : index
      %c0_65 = arith.constant 0 : index
      %137 = vector.load %arg2[%c0_63, %c0_64, %c0_65] : memref<2x8x32xf32, #tpu.memory_space<vmem>>, vector<2x8x32xf32>
      %c0_66 = arith.constant 0 : index
      %c0_67 = arith.constant 0 : index
      %138 = vector.load %arg3[%c0_66, %c0_67] : memref<8x32xf32, #tpu.memory_space<vmem>>, vector<8x32xf32>
      %139 = vector.shape_cast %138 : vector<8x32xf32> to vector<1x8x32xf32>
      %140 = vector.broadcast %139 : vector<1x8x32xf32> to vector<2x8x32xf32>
      %141 = arith.addf %137, %140 : vector<2x8x32xf32>
      %142 = vector.shape_cast %141 : vector<2x8x32xf32> to vector<16x32xf32>
      %c0_68 = arith.constant 0 : index
      %c0_69 = arith.constant 0 : index
      %143 = vector.load %arg21[%c0_68, %c0_69] : memref<16x32xf32, #tpu.memory_space<vmem>>, vector<16x32xf32>
      tpu.vector_store %arg21[%c0_68, %c0_69], %142 {strides = array<i32>} : memref<16x32xf32, #tpu.memory_space<vmem>>, vector<16x32xf32>,
    } else {
    }
    %c0 = arith.constant 0 : index
    %c0_1 = arith.constant 0 : index
    %3 = vector.load %arg21[%c0, %c0_1] : memref<16x32xf32, #tpu.memory_space<vmem>>, vector<16x32xf32>
    %c0_2 = arith.constant 0 : index
    %c0_3 = arith.constant 0 : index
    %c0_4 = arith.constant 0 : index
    %4 = vector.load %arg5[%c0_2, %c0_3, %c0_4] : memref<1x1x32xf32, #tpu.memory_space<vmem>>, vector<1x1x32xf32>
    %5 = vector.shape_cast %4 : vector<1x1x32xf32> to vector<1x32xf32>
    %c0_5 = arith.constant 0 : index
    %c0_6 = arith.constant 0 : index
    %c0_7 = arith.constant 0 : index
    %6 = vector.load %arg6[%c0_5, %c0_6, %c0_7] : memref<1x1x32xf32, #tpu.memory_space<vmem>>, vector<1x1x32xf32>
    %7 = vector.shape_cast %6 : vector<1x1x32xf32> to vector<1x32xf32>
    %cst = arith.constant dense<0.000000e+00> : vector<16xf32>
    %8 = vector.multi_reduction <add>, %3, %cst [1] : vector<16x32xf32> to vector<16xf32>
    %9 = vector.shape_cast %8 : vector<16xf32> to vector<16x1xf32>
    %cst_8 = arith.constant 3.200000e+01 : f32
    %10 = vector.broadcast %cst_8 : f32 to vector<16x1xf32>
    %11 = arith.divf %9, %10 : vector<16x1xf32>
    %12 = vector.broadcast %11 : vector<16x1xf32> to vector<16x32xf32>
    %13 = arith.subf %3, %12 : vector<16x32xf32>
    %14 = arith.mulf %13, %13 : vector<16x32xf32>
    %cst_9 = arith.constant dense<0.000000e+00> : vector<16xf32>
    %15 = vector.multi_reduction <add>, %14, %cst_9 [1] : vector<16x32xf32> to vector<16xf32>
    %16 = vector.shape_cast %15 : vector<16xf32> to vector<16x1xf32>
    %cst_10 = arith.constant 3.200000e+01 : f32
    %17 = vector.broadcast %cst_10 : f32 to vector<16x1xf32>
    %18 = arith.divf %16, %17 : vector<16x1xf32>
    %19 = vector.broadcast %11 : vector<16x1xf32> to vector<16x32xf32>
    %20 = arith.subf %3, %19 : vector<16x32xf32>
    %cst_11 = arith.constant 9.99999974E-6 : f32
    %21 = vector.broadcast %cst_11 : f32 to vector<16x1xf32>
    %22 = arith.addf %18, %21 : vector<16x1xf32>
    %23 = math.rsqrt %22 : vector<16x1xf32>
    %24 = vector.broadcast %23 : vector<16x1xf32> to vector<16x32xf32>
    %25 = arith.mulf %20, %24 : vector<16x32xf32>
    %26 = vector.broadcast %5 : vector<1x32xf32> to vector<16x32xf32>
    %27 = arith.mulf %25, %26 : vector<16x32xf32>
    %28 = vector.broadcast %7 : vector<1x32xf32> to vector<16x32xf32>
    %29 = arith.addf %27, %28 : vector<16x32xf32>
    %c0_12 = arith.constant 0 : index
    %c0_13 = arith.constant 0 : index
    %c0_14 = arith.constant 0 : index
    %30 = vector.load %arg7[%c0_12, %c0_13, %c0_14] : memref<1x32x96xf32, #tpu.memory_space<vmem>>, vector<1x32x96xf32>
    %31 = vector.shape_cast %30 : vector<1x32x96xf32> to vector<32x96xf32>
    %cst_15 = arith.constant dense<0.000000e+00> : vector<16x96xf32>
    %32 = tpu.matmul %29, %31, %cst_15 {dimension_numbers = #tpu.dot_dimension_numbers<[1], [0], [0], [1], [0, 0, 1, 1], [], []>} : vector<16x32xf32>, vector<32x96xf32>, vector<16x96xf32> -> vector<16x96xf32>
    %c0_16 = arith.constant 0 : index
    %c0_17 = arith.constant 0 : index
    %c0_18 = arith.constant 0 : index
    %33 = vector.load %arg8[%c0_16, %c0_17, %c0_18] : memref<1x1x96xf32, #tpu.memory_space<vmem>>, vector<1x1x96xf32>
    %34 = vector.shape_cast %33 : vector<1x1x96xf32> to vector<1x96xf32>
    %35 = vector.broadcast %34 : vector<1x96xf32> to vector<16x96xf32>
    %36 = arith.addf %32, %35 : vector<16x96xf32>
    %37 = vector.extract_strided_slice %36 {offsets = [0, 0], sizes = [16, 32], strides = [1, 1]} : vector<16x96xf32> to vector<16x32xf32>
    %38 = vector.extract_strided_slice %36 {offsets = [0, 32], sizes = [16, 32], strides = [1, 1]} : vector<16x96xf32> to vector<16x32xf32>
    %39 = vector.extract_strided_slice %36 {offsets = [0, 64], sizes = [16, 32], strides = [1, 1]} : vector<16x96xf32> to vector<16x32xf32>
    %40 = vector.extract_strided_slice %37 {offsets = [0, 0], sizes = [16, 8], strides = [1, 1]} : vector<16x32xf32> to vector<16x8xf32>
    %41 = vector.extract_strided_slice %37 {offsets = [0, 8], sizes = [16, 8], strides = [1, 1]} : vector<16x32xf32> to vector<16x8xf32>
    %42 = vector.extract_strided_slice %37 {offsets = [0, 16], sizes = [16, 8], strides = [1, 1]} : vector<16x32xf32> to vector<16x8xf32>
    %43 = vector.extract_strided_slice %37 {offsets = [0, 24], sizes = [16, 8], strides = [1, 1]} : vector<16x32xf32> to vector<16x8xf32>
    %44 = tpu.concatenate %40, %41, %42, %43 in 0 : vector<16x8xf32>, vector<16x8xf32>, vector<16x8xf32>, vector<16x8xf32> -> vector<64x8xf32>
    %cst_19 = arith.constant 0.353553385 : f32
    %45 = vector.broadcast %cst_19 : f32 to vector<64x8xf32>
    %46 = arith.mulf %44, %45 : vector<64x8xf32>
    %47 = vector.extract_strided_slice %38 {offsets = [0, 0], sizes = [16, 8], strides = [1, 1]} : vector<16x32xf32> to vector<16x8xf32>
    %48 = vector.extract_strided_slice %38 {offsets = [0, 8], sizes = [16, 8], strides = [1, 1]} : vector<16x32xf32> to vector<16x8xf32>
    %49 = vector.extract_strided_slice %38 {offsets = [0, 16], sizes = [16, 8], strides = [1, 1]} : vector<16x32xf32> to vector<16x8xf32>
    %50 = vector.extract_strided_slice %38 {offsets = [0, 24], sizes = [16, 8], strides = [1, 1]} : vector<16x32xf32> to vector<16x8xf32>
    %51 = tpu.concatenate %47, %48, %49, %50 in 0 : vector<16x8xf32>, vector<16x8xf32>, vector<16x8xf32>, vector<16x8xf32> -> vector<64x8xf32>
    %52 = vector.extract_strided_slice %39 {offsets = [0, 0], sizes = [16, 8], strides = [1, 1]} : vector<16x32xf32> to vector<16x8xf32>
    %53 = vector.extract_strided_slice %39 {offsets = [0, 8], sizes = [16, 8], strides = [1, 1]} : vector<16x32xf32> to vector<16x8xf32>
    %54 = vector.extract_strided_slice %39 {offsets = [0, 16], sizes = [16, 8], strides = [1, 1]} : vector<16x32xf32> to vector<16x8xf32>
    %55 = vector.extract_strided_slice %39 {offsets = [0, 24], sizes = [16, 8], strides = [1, 1]} : vector<16x32xf32> to vector<16x8xf32>
    %56 = tpu.concatenate %52, %53, %54, %55 in 0 : vector<16x8xf32>, vector<16x8xf32>, vector<16x8xf32>, vector<16x8xf32> -> vector<64x8xf32>
    %cst_20 = arith.constant dense<0.000000e+00> : vector<64x64xf32>
    %57 = tpu.matmul %46, %51, %cst_20 {dimension_numbers = #tpu.dot_dimension_numbers<[1], [1], [0], [0], [0, 0, 1, 0], [], []>} : vector<64x8xf32>, vector<64x8xf32>, vector<64x64xf32> -> vector<64x64xf32>
    %c0_21 = arith.constant 0 : index
    %c0_22 = arith.constant 0 : index
    %58 = vector.load %arg4[%c0_21, %c0_22] : memref<64x64xf32, #tpu.memory_space<vmem>>, vector<64x64xf32>
    %59 = arith.addf %57, %58 : vector<64x64xf32>
    %cst_23 = arith.constant dense<0xFF800000> : vector<64xf32>
    %60 = vector.multi_reduction <maximumf>, %59, %cst_23 [1] : vector<64x64xf32> to vector<64xf32>
    %61 = vector.shape_cast %60 : vector<64xf32> to vector<64x1xf32>
    %62 = vector.broadcast %61 : vector<64x1xf32> to vector<64x64xf32>
    %63 = arith.subf %59, %62 : vector<64x64xf32>
    %64 = math.exp %63 : vector<64x64xf32>
    %cst_24 = arith.constant dense<0.000000e+00> : vector<64xf32>
    %65 = vector.multi_reduction <add>, %64, %cst_24 [1] : vector<64x64xf32> to vector<64xf32>
    %66 = vector.shape_cast %65 : vector<64xf32> to vector<64x1xf32>
    %67 = tpu.reciprocal %66 {approx = true} : vector<64x1xf32> -> vector<64x1xf32>
    %68 = vector.broadcast %67 : vector<64x1xf32> to vector<64x64xf32>
    %69 = arith.mulf %64, %68 : vector<64x64xf32>
    %cst_25 = arith.constant dense<0.000000e+00> : vector<64x8xf32>
    %70 = tpu.matmul %69, %56, %cst_25 {dimension_numbers = #tpu.dot_dimension_numbers<[1], [0], [0], [1], [0, 0, 1, 1], [], []>} : vector<64x64xf32>, vector<64x8xf32>, vector<64x8xf32> -> vector<64x8xf32>
    %71 = vector.extract_strided_slice %70 {offsets = [0, 0], sizes = [16, 8], strides = [1, 1]} : vector<64x8xf32> to vector<16x8xf32>
    %72 = vector.extract_strided_slice %70 {offsets = [16, 0], sizes = [16, 8], strides = [1, 1]} : vector<64x8xf32> to vector<16x8xf32>
    %73 = vector.extract_strided_slice %70 {offsets = [32, 0], sizes = [16, 8], strides = [1, 1]} : vector<64x8xf32> to vector<16x8xf32>
    %74 = vector.extract_strided_slice %70 {offsets = [48, 0], sizes = [16, 8], strides = [1, 1]} : vector<64x8xf32> to vector<16x8xf32>
    %75 = tpu.concatenate %71, %72, %73, %74 in 1 : vector<16x8xf32>, vector<16x8xf32>, vector<16x8xf32>, vector<16x8xf32> -> vector<16x32xf32>
    %c0_26 = arith.constant 0 : index
    %c0_27 = arith.constant 0 : index
    %c0_28 = arith.constant 0 : index
    %76 = vector.load %arg9[%c0_26, %c0_27, %c0_28] : memref<1x32x32xf32, #tpu.memory_space<vmem>>, vector<1x32x32xf32>
    %77 = vector.shape_cast %76 : vector<1x32x32xf32> to vector<32x32xf32>
    %cst_29 = arith.constant dense<0.000000e+00> : vector<16x32xf32>
    %78 = tpu.matmul %75, %77, %cst_29 {dimension_numbers = #tpu.dot_dimension_numbers<[1], [0], [0], [1], [0, 0, 1, 1], [], []>} : vector<16x32xf32>, vector<32x32xf32>, vector<16x32xf32> -> vector<16x32xf32>
    %79 = arith.addf %3, %78 : vector<16x32xf32>
    %c0_30 = arith.constant 0 : index
    %c0_31 = arith.constant 0 : index
    %c0_32 = arith.constant 0 : index
    %80 = vector.load %arg10[%c0_30, %c0_31, %c0_32] : memref<1x1x32xf32, #tpu.memory_space<vmem>>, vector<1x1x32xf32>
    %81 = vector.shape_cast %80 : vector<1x1x32xf32> to vector<1x32xf32>
    %82 = vector.broadcast %81 : vector<1x32xf32> to vector<16x32xf32>
    %83 = arith.addf %79, %82 : vector<16x32xf32>
    %c0_33 = arith.constant 0 : index
    %c0_34 = arith.constant 0 : index
    %c0_35 = arith.constant 0 : index
    %84 = vector.load %arg11[%c0_33, %c0_34, %c0_35] : memref<1x1x32xf32, #tpu.memory_space<vmem>>, vector<1x1x32xf32>
    %85 = vector.shape_cast %84 : vector<1x1x32xf32> to vector<1x32xf32>
    %c0_36 = arith.constant 0 : index
    %c0_37 = arith.constant 0 : index
    %c0_38 = arith.constant 0 : index
    %86 = vector.load %arg12[%c0_36, %c0_37, %c0_38] : memref<1x1x32xf32, #tpu.memory_space<vmem>>, vector<1x1x32xf32>
    %87 = vector.shape_cast %86 : vector<1x1x32xf32> to vector<1x32xf32>
    %cst_39 = arith.constant dense<0.000000e+00> : vector<16xf32>
    %88 = vector.multi_reduction <add>, %83, %cst_39 [1] : vector<16x32xf32> to vector<16xf32>
    %89 = vector.shape_cast %88 : vector<16xf32> to vector<16x1xf32>
    %cst_40 = arith.constant 3.200000e+01 : f32
    %90 = vector.broadcast %cst_40 : f32 to vector<16x1xf32>
    %91 = arith.divf %89, %90 : vector<16x1xf32>
    %92 = vector.broadcast %91 : vector<16x1xf32> to vector<16x32xf32>
    %93 = arith.subf %83, %92 : vector<16x32xf32>
    %94 = arith.mulf %93, %93 : vector<16x32xf32>
    %cst_41 = arith.constant dense<0.000000e+00> : vector<16xf32>
    %95 = vector.multi_reduction <add>, %94, %cst_41 [1] : vector<16x32xf32> to vector<16xf32>
    %96 = vector.shape_cast %95 : vector<16xf32> to vector<16x1xf32>
    %cst_42 = arith.constant 3.200000e+01 : f32
    %97 = vector.broadcast %cst_42 : f32 to vector<16x1xf32>
    %98 = arith.divf %96, %97 : vector<16x1xf32>
    %99 = vector.broadcast %91 : vector<16x1xf32> to vector<16x32xf32>
    %100 = arith.subf %83, %99 : vector<16x32xf32>
    %cst_43 = arith.constant 9.99999974E-6 : f32
    %101 = vector.broadcast %cst_43 : f32 to vector<16x1xf32>
    %102 = arith.addf %98, %101 : vector<16x1xf32>
    %103 = math.rsqrt %102 : vector<16x1xf32>
    %104 = vector.broadcast %103 : vector<16x1xf32> to vector<16x32xf32>
    %105 = arith.mulf %100, %104 : vector<16x32xf32>
    %106 = vector.broadcast %85 : vector<1x32xf32> to vector<16x32xf32>
    %107 = arith.mulf %105, %106 : vector<16x32xf32>
    %108 = vector.broadcast %87 : vector<1x32xf32> to vector<16x32xf32>
    %109 = arith.addf %107, %108 : vector<16x32xf32>
    %c0_44 = arith.constant 0 : index
    %c0_45 = arith.constant 0 : index
    %c0_46 = arith.constant 0 : index
    %110 = vector.load %arg13[%c0_44, %c0_45, %c0_46] : memref<1x32x128xf32, #tpu.memory_space<vmem>>, vector<1x32x128xf32>
    %111 = vector.shape_cast %110 : vector<1x32x128xf32> to vector<32x128xf32>
    %cst_47 = arith.constant dense<0.000000e+00> : vector<16x128xf32>
    %112 = tpu.matmul %109, %111, %cst_47 {dimension_numbers = #tpu.dot_dimension_numbers<[1], [0], [0], [1], [0, 0, 1, 1], [], []>} : vector<16x32xf32>, vector<32x128xf32>, vector<16x128xf32> -> vector<16x128xf32>
    %c0_48 = arith.constant 0 : index
    %c0_49 = arith.constant 0 : index
    %c0_50 = arith.constant 0 : index
    %113 = vector.load %arg14[%c0_48, %c0_49, %c0_50] : memref<1x1x128xf32, #tpu.memory_space<vmem>>, vector<1x1x128xf32>
    %114 = vector.shape_cast %113 : vector<1x1x128xf32> to vector<1x128xf32>
    %115 = vector.broadcast %114 : vector<1x128xf32> to vector<16x128xf32>
    %116 = arith.addf %112, %115 : vector<16x128xf32>
    %cst_51 = arith.constant 1.702000e+00 : f32
    %117 = vector.broadcast %cst_51 : f32 to vector<16x128xf32>
    %118 = arith.mulf %117, %116 : vector<16x128xf32>
    %119 = arith.negf %118 : vector<16x128xf32>
    %120 = math.exp %119 : vector<16x128xf32>
    %cst_52 = arith.constant 1.000000e+00 : f32
    %121 = vector.broadcast %cst_52 : f32 to vector<16x128xf32>
    %122 = arith.addf %121, %120 : vector<16x128xf32>
    %123 = arith.divf %121, %122 : vector<16x128xf32>
    %124 = arith.mulf %116, %123 : vector<16x128xf32>
    %c0_53 = arith.constant 0 : index
    %c0_54 = arith.constant 0 : index
    %c0_55 = arith.constant 0 : index
    %125 = vector.load %arg15[%c0_53, %c0_54, %c0_55] : memref<1x128x32xf32, #tpu.memory_space<vmem>>, vector<1x128x32xf32>
    %126 = vector.shape_cast %125 : vector<1x128x32xf32> to vector<128x32xf32>
    %cst_56 = arith.constant dense<0.000000e+00> : vector<16x32xf32>
    %127 = tpu.matmul %124, %126, %cst_56 {dimension_numbers = #tpu.dot_dimension_numbers<[1], [0], [0], [1], [0, 0, 1, 1], [], []>} : vector<16x128xf32>, vector<128x32xf32>, vector<16x32xf32> -> vector<16x32xf32>
    %128 = arith.addf %83, %127 : vector<16x32xf32>
    %c0_57 = arith.constant 0 : index
    %c0_58 = arith.constant 0 : index
    %c0_59 = arith.constant 0 : index
    %129 = vector.load %arg16[%c0_57, %c0_58, %c0_59] : memref<1x1x32xf32, #tpu.memory_space<vmem>>, vector<1x1x32xf32>
    %130 = vector.shape_cast %129 : vector<1x1x32xf32> to vector<1x32xf32>
    %131 = vector.broadcast %130 : vector<1x32xf32> to vector<16x32xf32>
    %132 = arith.addf %128, %131 : vector<16x32xf32>
    %c0_60 = arith.constant 0 : index
    %c0_61 = arith.constant 0 : index
    %133 = vector.load %arg21[%c0_60, %c0_61] : memref<16x32xf32, #tpu.memory_space<vmem>>, vector<16x32xf32>
    tpu.vector_store %arg21[%c0_60, %c0_61], %132 {strides = array<i32>} : memref<16x32xf32, #tpu.memory_space<vmem>>, vector<16x32xf32>,
    %c1_i32 = arith.constant 1 : i32
    %134 = arith.cmpi eq, %arg0, %c1_i32 : i32
    %135 = arith.extui %134 : i1 to i32
    %c0_i32_62 = arith.constant 0 : i32
    %136 = arith.cmpi ne, %135, %c0_i32_62 : i32
    scf.if %136 {
      %137 = tpu.iota {dimensions = array<i32: 0>} : vector<2x16xi32>
      %138 = tpu.iota {dimensions = array<i32: 1>} : vector<2x16xi32>
      %cst_63 = arith.constant 0.000000e+00 : f32
      %139 = vector.broadcast %cst_63 : f32 to vector<2x16xf32>
      %c0_64 = arith.constant 0 : index
      %140 = memref.load %arg1[%c0_64] : memref<2xi32, #tpu.memory_space<smem>>
      %c0_i32_65 = arith.constant 0 : i32
      %141 = arith.addi %c0_i32_65, %140 : i32
      %c0_i32_66 = arith.constant 0 : i32
      %142 = vector.broadcast %c0_i32_66 : i32 to vector<2x16xi32>
      %143 = arith.cmpi eq, %137, %142 : vector<2x16xi32>
      %144 = vector.broadcast %141 : i32 to vector<2x16xi32>
      %145 = arith.cmpi eq, %138, %144 : vector<2x16xi32>
      %146 = arith.andi %143, %145 : vector<2x16xi1>
      %cst_67 = arith.constant 1.000000e+00 : f32
      %147 = vector.broadcast %cst_67 : f32 to vector<2x16xf32>
      %148 = arith.select %146, %147, %139 : vector<2x16xi1>, vector<2x16xf32>
      %c1 = arith.constant 1 : index
      %149 = memref.load %arg1[%c1] : memref<2xi32, #tpu.memory_space<smem>>
      %c8_i32 = arith.constant 8 : i32
      %150 = arith.addi %c8_i32, %149 : i32
      %c1_i32_68 = arith.constant 1 : i32
      %151 = vector.broadcast %c1_i32_68 : i32 to vector<2x16xi32>
      %152 = arith.cmpi eq, %137, %151 : vector<2x16xi32>
      %153 = vector.broadcast %150 : i32 to vector<2x16xi32>
      %154 = arith.cmpi eq, %138, %153 : vector<2x16xi32>
      %155 = arith.andi %152, %154 : vector<2x16xi1>
      %cst_69 = arith.constant 1.000000e+00 : f32
      %156 = vector.broadcast %cst_69 : f32 to vector<2x16xf32>
      %157 = arith.select %155, %156, %148 : vector<2x16xi1>, vector<2x16xf32>
      %cst_70 = arith.constant dense<0.000000e+00> : vector<2x32xf32>
      %158 = tpu.matmul %157, %132, %cst_70 {dimension_numbers = #tpu.dot_dimension_numbers<[1], [0], [0], [1], [0, 0, 1, 1], [], []>} : vector<2x16xf32>, vector<16x32xf32>, vector<2x32xf32> -> vector<2x32xf32>
      %c0_71 = arith.constant 0 : index
      %c0_72 = arith.constant 0 : index
      %159 = vector.load %arg17[%c0_71, %c0_72] : memref<1x32xf32, #tpu.memory_space<vmem>>, vector<1x32xf32>
      %c0_73 = arith.constant 0 : index
      %c0_74 = arith.constant 0 : index
      %160 = vector.load %arg18[%c0_73, %c0_74] : memref<1x32xf32, #tpu.memory_space<vmem>>, vector<1x32xf32>
      %cst_75 = arith.constant dense<0.000000e+00> : vector<2xf32>
      %161 = vector.multi_reduction <add>, %158, %cst_75 [1] : vector<2x32xf32> to vector<2xf32>
      %162 = vector.shape_cast %161 : vector<2xf32> to vector<2x1xf32>
      %cst_76 = arith.constant 3.200000e+01 : f32
      %163 = vector.broadcast %cst_76 : f32 to vector<2x1xf32>
      %164 = arith.divf %162, %163 : vector<2x1xf32>
      %165 = vector.broadcast %164 : vector<2x1xf32> to vector<2x32xf32>
      %166 = arith.subf %158, %165 : vector<2x32xf32>
      %167 = arith.mulf %166, %166 : vector<2x32xf32>
      %cst_77 = arith.constant dense<0.000000e+00> : vector<2xf32>
      %168 = vector.multi_reduction <add>, %167, %cst_77 [1] : vector<2x32xf32> to vector<2xf32>
      %169 = vector.shape_cast %168 : vector<2xf32> to vector<2x1xf32>
      %cst_78 = arith.constant 3.200000e+01 : f32
      %170 = vector.broadcast %cst_78 : f32 to vector<2x1xf32>
      %171 = arith.divf %169, %170 : vector<2x1xf32>
      %172 = vector.broadcast %164 : vector<2x1xf32> to vector<2x32xf32>
      %173 = arith.subf %158, %172 : vector<2x32xf32>
      %cst_79 = arith.constant 9.99999974E-6 : f32
      %174 = vector.broadcast %cst_79 : f32 to vector<2x1xf32>
      %175 = arith.addf %171, %174 : vector<2x1xf32>
      %176 = math.rsqrt %175 : vector<2x1xf32>
      %177 = vector.broadcast %176 : vector<2x1xf32> to vector<2x32xf32>
      %178 = arith.mulf %173, %177 : vector<2x32xf32>
      %179 = vector.broadcast %159 : vector<1x32xf32> to vector<2x32xf32>
      %180 = arith.mulf %178, %179 : vector<2x32xf32>
      %181 = vector.broadcast %160 : vector<1x32xf32> to vector<2x32xf32>
      %182 = arith.addf %180, %181 : vector<2x32xf32>
      %c0_80 = arith.constant 0 : index
      %c0_81 = arith.constant 0 : index
      %183 = vector.load %arg19[%c0_80, %c0_81] : memref<32x16xf32, #tpu.memory_space<vmem>>, vector<32x16xf32>
      %cst_82 = arith.constant dense<0.000000e+00> : vector<2x16xf32>
      %184 = tpu.matmul %182, %183, %cst_82 {dimension_numbers = #tpu.dot_dimension_numbers<[1], [0], [0], [1], [0, 0, 1, 1], [], []>} : vector<2x32xf32>, vector<32x16xf32>, vector<2x16xf32> -> vector<2x16xf32>
      %c0_83 = arith.constant 0 : index
      %c0_84 = arith.constant 0 : index
      %185 = vector.load %arg20[%c0_83, %c0_84] : memref<2x16xf32, #tpu.memory_space<vmem>>, vector<2x16xf32>
      tpu.vector_store %arg20[%c0_83, %c0_84], %184 {strides = array<i32>} : memref<2x16xf32, #tpu.memory_space<vmem>>, vector<2x16xf32>,
    } else {
    }
    return
  }
  func.func @transform_0(%arg0: i32, %arg1: memref<2xi32, #tpu.memory_space<smem>>) -> (i32, i32, i32) {
    %c0_i32 = arith.constant 0 : i32
    %c0_i32_0 = arith.constant 0 : i32
    %c0_i32_1 = arith.constant 0 : i32
    %c0_i32_2 = arith.constant 0 : i32
    return %c0_i32, %c0_i32_0, %c0_i32_1 : i32, i32, i32
  }
  func.func @transform_1(%arg0: i32, %arg1: memref<2xi32, #tpu.memory_space<smem>>) -> (i32, i32) {
    %c0_i32 = arith.constant 0 : i32
    %c0_i32_0 = arith.constant 0 : i32
    %c0_i32_1 = arith.constant 0 : i32
    return %c0_i32, %c0_i32_0 : i32, i32
  }
  func.func @transform_2(%arg0: i32, %arg1: memref<2xi32, #tpu.memory_space<smem>>) -> (i32, i32) {
    %c0_i32 = arith.constant 0 : i32
    %c0_i32_0 = arith.constant 0 : i32
    %c0_i32_1 = arith.constant 0 : i32
    return %c0_i32, %c0_i32_0 : i32, i32
  }
  func.func @transform_3(%arg0: i32, %arg1: memref<2xi32, #tpu.memory_space<smem>>) -> (i32, i32, i32) {
    %c0_i32 = arith.constant 0 : i32
    %c0_i32_0 = arith.constant 0 : i32
    %c0_i32_1 = arith.constant 0 : i32
    return %arg0, %c0_i32, %c0_i32_0 : i32, i32, i32
  }
  func.func @transform_4(%arg0: i32, %arg1: memref<2xi32, #tpu.memory_space<smem>>) -> (i32, i32, i32) {
    %c0_i32 = arith.constant 0 : i32
    %c0_i32_0 = arith.constant 0 : i32
    %c0_i32_1 = arith.constant 0 : i32
    return %arg0, %c0_i32, %c0_i32_0 : i32, i32, i32
  }
  func.func @transform_5(%arg0: i32, %arg1: memref<2xi32, #tpu.memory_space<smem>>) -> (i32, i32, i32) {
    %c0_i32 = arith.constant 0 : i32
    %c0_i32_0 = arith.constant 0 : i32
    %c0_i32_1 = arith.constant 0 : i32
    return %arg0, %c0_i32, %c0_i32_0 : i32, i32, i32
  }
  func.func @transform_6(%arg0: i32, %arg1: memref<2xi32, #tpu.memory_space<smem>>) -> (i32, i32, i32) {
    %c0_i32 = arith.constant 0 : i32
    %c0_i32_0 = arith.constant 0 : i32
    %c0_i32_1 = arith.constant 0 : i32
    return %arg0, %c0_i32, %c0_i32_0 : i32, i32, i32
  }
  func.func @transform_7(%arg0: i32, %arg1: memref<2xi32, #tpu.memory_space<smem>>) -> (i32, i32, i32) {
    %c0_i32 = arith.constant 0 : i32
    %c0_i32_0 = arith.constant 0 : i32
    %c0_i32_1 = arith.constant 0 : i32
    return %arg0, %c0_i32, %c0_i32_0 : i32, i32, i32
  }
  func.func @transform_8(%arg0: i32, %arg1: memref<2xi32, #tpu.memory_space<smem>>) -> (i32, i32, i32) {
    %c0_i32 = arith.constant 0 : i32
    %c0_i32_0 = arith.constant 0 : i32
    %c0_i32_1 = arith.constant 0 : i32
    return %arg0, %c0_i32, %c0_i32_0 : i32, i32, i32
  }
  func.func @transform_9(%arg0: i32, %arg1: memref<2xi32, #tpu.memory_space<smem>>) -> (i32, i32, i32) {
    %c0_i32 = arith.constant 0 : i32
    %c0_i32_0 = arith.constant 0 : i32
    %c0_i32_1 = arith.constant 0 : i32
    return %arg0, %c0_i32, %c0_i32_0 : i32, i32, i32
  }
  func.func @transform_10(%arg0: i32, %arg1: memref<2xi32, #tpu.memory_space<smem>>) -> (i32, i32, i32) {
    %c0_i32 = arith.constant 0 : i32
    %c0_i32_0 = arith.constant 0 : i32
    %c0_i32_1 = arith.constant 0 : i32
    return %arg0, %c0_i32, %c0_i32_0 : i32, i32, i32
  }
  func.func @transform_11(%arg0: i32, %arg1: memref<2xi32, #tpu.memory_space<smem>>) -> (i32, i32, i32) {
    %c0_i32 = arith.constant 0 : i32
    %c0_i32_0 = arith.constant 0 : i32
    %c0_i32_1 = arith.constant 0 : i32
    return %arg0, %c0_i32, %c0_i32_0 : i32, i32, i32
  }
  func.func @transform_12(%arg0: i32, %arg1: memref<2xi32, #tpu.memory_space<smem>>) -> (i32, i32, i32) {
    %c0_i32 = arith.constant 0 : i32
    %c0_i32_0 = arith.constant 0 : i32
    %c0_i32_1 = arith.constant 0 : i32
    return %arg0, %c0_i32, %c0_i32_0 : i32, i32, i32
  }
  func.func @transform_13(%arg0: i32, %arg1: memref<2xi32, #tpu.memory_space<smem>>) -> (i32, i32, i32) {
    %c0_i32 = arith.constant 0 : i32
    %c0_i32_0 = arith.constant 0 : i32
    %c0_i32_1 = arith.constant 0 : i32
    return %arg0, %c0_i32, %c0_i32_0 : i32, i32, i32
  }
  func.func @transform_14(%arg0: i32, %arg1: memref<2xi32, #tpu.memory_space<smem>>) -> (i32, i32, i32) {
    %c0_i32 = arith.constant 0 : i32
    %c0_i32_0 = arith.constant 0 : i32
    %c0_i32_1 = arith.constant 0 : i32
    return %arg0, %c0_i32, %c0_i32_0 : i32, i32, i32
  }
  func.func @transform_15(%arg0: i32, %arg1: memref<2xi32, #tpu.memory_space<smem>>) -> (i32, i32) {
    %c0_i32 = arith.constant 0 : i32
    %c0_i32_0 = arith.constant 0 : i32
    %c0_i32_1 = arith.constant 0 : i32
    return %c0_i32, %c0_i32_0 : i32, i32
  }
  func.func @transform_16(%arg0: i32, %arg1: memref<2xi32, #tpu.memory_space<smem>>) -> (i32, i32) {
    %c0_i32 = arith.constant 0 : i32
    %c0_i32_0 = arith.constant 0 : i32
    %c0_i32_1 = arith.constant 0 : i32
    return %c0_i32, %c0_i32_0 : i32, i32
  }
  func.func @transform_17(%arg0: i32, %arg1: memref<2xi32, #tpu.memory_space<smem>>) -> (i32, i32) {
    %c0_i32 = arith.constant 0 : i32
    %c0_i32_0 = arith.constant 0 : i32
    %c0_i32_1 = arith.constant 0 : i32
    return %c0_i32, %c0_i32_0 : i32, i32
  }
  func.func @transform_18(%arg0: i32, %arg1: memref<2xi32, #tpu.memory_space<smem>>) -> (i32, i32) {
    %c0_i32 = arith.constant 0 : i32
    %c0_i32_0 = arith.constant 0 : i32
    %c0_i32_1 = arith.constant 0 : i32
    return %c0_i32, %c0_i32_0 : i32, i32
  }
}

</mosaic_0001>

<bundles_post_ra>
// kernel: tpu_custom_call.1
= control target key start
LH: loop header
LB: loop body
LE: loop exit
PB: predicated region body
PF: predicated region fallthrough
CT: control target
= control target key end

     0   :  { %s3096_s0 = inlined_call_operand.vmem [shape: s32[2], index: 0, kind: input, shape index: {}]   ;;  %s3097_s1 = inlined_call_operand.vmem [shape: f32[2,8,32], index: 1, kind: input, shape index: {}]   ;;  %s3098_s2 = inlined_call_operand.vmem [shape: f32[8,32], index: 2, kind: input, shape index: {}]   ;;  %s3099_s3 = inlined_call_operand.vmem [shape: f32[64,64], index: 3, kind: input, shape index: {}]   ;;  %s3100_s4 = inlined_call_operand.vmem [shape: f32[2,1,32], index: 4, kind: input, shape index: {}]   ;;  %s3101_s5 = inlined_call_operand.vmem [shape: f32[2,1,32], index: 5, kind: input, shape index: {}]   ;;  %s3102_s6 = inlined_call_operand.vmem [shape: f32[2,32,96], index: 6, kind: input, shape index: {}]   ;;  %s3103_s7 = inlined_call_operand.vmem [shape: f32[2,1,96], index: 7, kind: input, shape index: {}]   ;;  %s3104_s8 = inlined_call_operand.vmem [shape: f32[2,32,32], index: 8, kind: input, shape index: {}]   ;;  %s3105_s9 = inlined_call_operand.vmem [shape: f32[2,1,32], index: 9, kind: input, shape index: {}]   ;;  %s3106_s10 = inlined_call_operand.vmem [shape: f32[2,1,32], index: 10, kind: input, shape index: {}]   ;;  %s3107_s11 = inlined_call_operand.vmem [shape: f32[2,1,32], index: 11, kind: input, shape index: {}]   ;;  %s3108_s12 = inlined_call_operand.vmem [shape: f32[2,32,128], index: 12, kind: input, shape index: {}]   ;;  %s3109_s13 = inlined_call_operand.vmem [shape: f32[2,1,128], index: 13, kind: input, shape index: {}]   ;;  %s3110_s14 = inlined_call_operand.vmem [shape: f32[2,128,32], index: 14, kind: input, shape index: {}]   ;;  %s3111_s15 = inlined_call_operand.vmem [shape: f32[2,1,32], index: 15, kind: input, shape index: {}]   ;;  %s3112_s16 = inlined_call_operand.vmem [shape: f32[1,32], index: 16, kind: input, shape index: {}]   ;;  %s3113_s17 = inlined_call_operand.vmem [shape: f32[1,32], index: 17, kind: input, shape index: {}]   ;;  %s3114_s18 = inlined_call_operand.vmem [shape: f32[32,16], index: 18, kind: input, shape index: {}]   ;;  %s3115_s19 = inlined_call_operand.hbm [shape: f32[2,16], index: 19, kind: output, shape index: {}]  }
   0x1   :  { %3121 = sst [smem:[#allocation10_spill]] %s3096_s0 }
   0x2   :  { %3122 = sst [smem:[#allocation11_spill]] %s3097_s1  ;;  %s3132_s20 = sld [smem:[#allocation10_spill]] }
   0x3   :  { %3123 = sst [smem:[#allocation12_spill]] %s3098_s2 }
   0x4   :  { %3124 = sst [smem:[#allocation13_spill]] %s3099_s3 }
   0x5   :  { %3125 = sst [smem:[#allocation14_spill]] %s3102_s6 }
   0x6   :  { %3126 = sst [smem:[#allocation15_spill]] %s3104_s8 }
   0x7   :  { %3127 = sst [smem:[#allocation16_spill]] %s3109_s13 }
   0x8   :  { %3128 = sst [smem:[#allocation17_spill]] %s3112_s16  ;;  %s24_s13 = sshll.u32 %s3132_s20, 4  ;;  %s25_s13 = int_to_ptr.vmem [resolvable:$true] %s24_s13 }
   0x9   :  { %3129 = sst [smem:[#allocation18_spill]] %s3113_s17  ;;  %s2581_s21 = scalar_lea.vmem %s25_s13, 16 }
   0xa   :  { %3130 = sst [smem:[#allocation19_spill]] %s3114_s18  ;;  %p2582_p0 = scmp.ne.s32.totalorder %s25_s13, %s2581_s21 }
   0xb   :  { %3131 = sst [smem:[#allocation20_spill]] %s3115_s19  ;;  %p2586_p1 = scmp.lt.s32.totalorder %s25_s13, %s25_s13 }
   0xc   :  { %p2587_p2 = scmp.lt.s32.totalorder %s2581_s21, %s2581_s21 }
   0xe   :  { %p2588_p3 = por %p2587_p2, %p2586_p1 }
  0x10   :  { %p2589_p4 = pnand %p2588_p3, %p2582_p0 }
  0x12   :  { %2592 = shalt.err (!%p2589_p4)  }
  0x13   :  { %s2633_s1 = smov [#allocation4]  }
  0x14   :  { %27 = dma.vmem_to_smem %s25_s13, 16, %s2633_s1, [#allocation3] }
  0x15   :  { %2623 = dma.done.wait [#allocation3], 16 }
  0x16   :  { %2624 = vsyncadd [#allocation3], 4294967280 }
  0x17   :  { %29 = sfence }
  0x18   :  { %30 = vsyncpa [#allocation6], 0  ;;  %s2749_s22 = smov 0  }
  0x19 LB: > { %3133 = sst [smem:[#allocation9_spill]] %s2631_s22  ;;  %s2755_s2 = sadd.s32 4294967295, %s2631_s22   ;;  %s2631_s22 = sphi %s2749_s22, %s36_s22  }
  0x1a   : > { %p2077_p5 = scmp.ge.s32.totalorder %s2631_s22, 1  ;;  %p609_p6 = scmp.lt.s32.totalorder %s2631_s22, 3 }
  0x1c   : > { %p610_p7 = pnand %p2077_p5, %p609_p6 }
  0x1d   : > { %p697_p8 = scmp.lt.s32.totalorder (!%p610_p7), %s2755_s2, 1  ;;  %s3134_s6 = sld [smem:[#allocation14_spill]] (!%p610_p7) }
  0x1e   : > { %613 = sbr.rel (%p610_p7) target bundleno = 3514 (0xdba), region = 92  ;;  %s3135_s8 = sld [smem:[#allocation15_spill]] (!%p610_p7) }
  0x1f   : > { %p2086_p9 = scmp.ne.s32.totalorder (!%p610_p7), %s2755_s2, 0 }
  0x25   : > { %s2761_s13 = scalar_select %p697_p8, %s2755_s2, 1 }
  0x26   : > { %s3137_s20 = sld [smem:[#allocation11_spill]] (!%p2086_p9)  ;;  %vm750_vm0 = vcmask (!%p2086_p9), 261120  }
  0x27   : > { %s2137_s28 = sshll.u32 %s2761_s13, 5  ;;  %s721_s17 = scalar_lea.vmem %s3106_s10, %s2761_s13 }
  0x28   : > { %s2779_s1 = scalar_lea.vmem %s3134_s6, %s2137_s28  ;;  %s2784_s22 = scalar_lea.vmem %s3135_s8, %s2137_s28 }
  0x29   : > { %s724_s30 = scalar_lea.vmem %s3107_s11, %s2761_s13  ;;  %s2801_s6 = scalar_lea.vmem %s3108_s12, %s2137_s28 }
  0x2a   : > { %s3136_s8 = sld [smem:[#allocation16_spill]]  ;;  %s2140_s18 = sshll.u32 %s2761_s13, 7 }
  0x2b   : > { %s2811_s3 = scalar_lea.vmem %s3110_s14, %s2140_s18  ;;  %s740_s29 = scalar_lea.vmem %s3111_s15, %s2761_s13 }
  0x2c   : > { %744 = sbr.rel (%p2086_p9) target bundleno = 58 (0x3a), region = 96  ;;  %v745_v0 = vld [vmem:[%s3137_s20] sm:$0xff] (!%p2086_p9)  ;;  %v746_v2 = vld [vmem:[%s3137_s20 + $0x8] sm:$0xff] (!%p2086_p9) }
  0x30   : > { %s732_s16 = scalar_lea.vmem %s3136_s8, %s2761_s13  ;;  %s3138_s8 = sld [smem:[#allocation12_spill]] (!%p2086_p9) }
  0x36   : > { %v747_v1 = vld [vmem:[%s3138_s8] sm:$0xff] }
  0x37   : > { %v748_v3 = vadd.f32 %v747_v1, %v745_v0  ;;  %v749_v4 = vadd.f32 %v747_v1, %v746_v2 }
  0x39   : > { %751 = vst.msk [vmem:[#allocation2] sm:$0xff] %vm750_vm0, %v748_v3  ;;  %752 = vst.msk [vmem:[#allocation2 + $0x8] sm:$0xff] %vm750_vm0, %v749_v4 }
  0x3a PF: > { %vm757_vm1 = vcmask 261120   ;;  %v801_v19 = vld [vmem:[%s2779_s1] sm:$0xff]  ;;  %v802_v20 = vld [vmem:[%s2779_s1 + $0x8] sm:$0xff]  ;;  %v803_v21 = vld [vmem:[%s2779_s1 + $0x10] sm:$0xff]  ;;  %s3140_s0 = scalar_lea.vmem %s3101_s5, %s2761_s13  ;;  %s3141_s23 = scalar_lea.vmem %s3103_s7, %s2761_s13  ;;  %vm945_vm2 = vcmask 64512   ;;  %vm1091_vm4 = vcmask 523264  }
  0x3b   : > { %v2359_v22 = vpack.c.bf16 %v802_v20, %v801_v19  ;;  %v804_v23 = vld [vmem:[%s2779_s1 + $0x18] sm:$0xff]  ;;  %s3139_s1 = scalar_lea.vmem %s3100_s4, %s2761_s13  ;;  %v2088_v34 = vld [vmem:[%s3140_s0] ss:$0 sm:$0xff]  ;;  %s2634_s8 = smov 120   ;;  %vm2872_vm3 = vmpackc.low %vm945_vm2, %vm945_vm2  ;;  %vm1359_vm5 = vcmask 130048   ;;  %vm1362_vm6 = vcmask 195584  }
  0x3c   : > { %v2363_v24 = vpack.c.bf16 %v804_v23, %v803_v21  ;;  %v2087_v32 = vld [vmem:[%s3139_s1] ss:$0 sm:$0xff]  ;;  %s2635_s24 = smov 112   ;;  %s2636_s19 = smov 104  }
  0x3d   : > { %2360 = vmatprep.subr.bf16.mxu0 %v2359_v22  ;;  %v2089_v41 = vld [vmem:[%s3141_s23] ss:$0 sm:$0xff]  ;;  %s2637_s18 = smov 96   ;;  %s3144_s27 = sld [smem:[#allocation13_spill]] }
  0x3e   : > { %2362 = vmatpush3.bf16.msra.mxu0 %v2359_v22  ;;  %s2638_s21 = smov 64   ;;  %s2639_s23 = smov 8  }
  0x3f   : > { %2364 = vmatprep.subr.bf16.mxu0 %v2363_v24  ;;  %p2127_p10 = scmp.ne.s32.totalorder %s2755_s2, 1 }
  0x40   : > { %v2827_v5 = vld [vmem:[#allocation2] sm:$0xff]  ;;  %v2829_v6 = vld [vmem:[#allocation2 + $0x8] sm:$0xff]  ;;  %s1725_s28 = sld [smem:[#allocation4]] (!%p2127_p10)  ;;  %vm2643_vm7 = vmmov (!%p2127_p10), 0   ;;  %vm1813_vm14 = vcmask (!%p2127_p10), 254976   ;;  %vm1918_vm15 = vcmask (!%p2127_p10), 123904  }
  0x41   : > { %v758_v7 = vsel %vm757_vm1, %v2827_v5, 0.0  ;;  %v761_v8 = vsel %vm757_vm1, %v2829_v6, 0.0 }
  0x42   : > { %759 = vadd.xlane.f32.xlu0 %v758_v7  ;;  %2366 = vmatpush3.bf16.msra.mxu0 %v2363_v24 }
  0x43   : > { %v922_v19 = vld [vmem:[%s3144_s27 + $0x8] sm:$0xff]  ;;  %v921_v20 = vld [vmem:[%s3144_s27] sm:$0xff] }
  0x46   : > { %762 = vadd.xlane.f32.xlu0 %v761_v8 }
  0xcf   : > { %v760_v9 = vpop.xlane.xlu0 %759 }
  0xd0   : > { %v765_v10 = vmul.f32 0.03125, %v760_v9 }
  0xd2   : > { %v767_v11 = vsub.f32 %v2827_v5, %v765_v10 }
  0xd3   : > { %v763_v12 = vpop.xlane.xlu0 %762 }
  0xd4   : > { %v766_v13 = vmul.f32 0.03125, %v763_v12  ;;  %v769_v14 = vmul.f32 %v767_v11, %v767_v11 }
  0xd6   : > { %v768_v15 = vsub.f32 %v2829_v6, %v766_v13  ;;  %v771_v16 = vsel %vm757_vm1, %v769_v14, 0.0 }
  0xd7   : > { %772 = vadd.xlane.f32.xlu1 %v771_v16 }
  0xd8   : > { %v770_v17 = vmul.f32 %v768_v15, %v768_v15 }
  0xda   : > { %v774_v18 = vsel %vm757_vm1, %v770_v17, 0.0 }
  0xdb   : > { %775 = vadd.xlane.f32.xlu1 %v774_v18 }
 0x164   : > { %v773_v25 = vpop.xlane.xlu1 %772 }
 0x165   : > { %v777_v26 = vmul.f32 0.03125, %v773_v25  ;;  %v924_v25 = vld [vmem:[%s3144_s27 + $0x18] sm:$0xff] }
 0x167   : > { %v779_v27 = vadd.f32 1e-05, %v777_v26 }
 0x168   : > { %v776_v28 = vpop.xlane.xlu1 %775 }
 0x169   : > { %2531 = vrsqrt.f32 %v779_v27  ;;  %v778_v29 = vmul.f32 0.03125, %v776_v28 }
 0x16b   : > { %v780_v30 = vadd.f32 1e-05, %v778_v29 }
 0x16d   : > { %2533 = vrsqrt.f32 %v780_v30 }
 0x173   : > { %v2532_v31 = vpop.eup %2531 }
 0x174   : > { %v783_v33 = vmul.f32 %v2532_v31, %v767_v11  ;;  %v923_v31 = vld [vmem:[%s3144_s27 + $0x10] sm:$0xff] }
 0x176   : > { %v791_v35 = vmul.f32 %v2087_v32, %v783_v33 }
 0x177   : > { %v2534_v36 = vpop.eup %2533 }
 0x178   : > { %v784_v37 = vmul.f32 %v2534_v36, %v768_v15  ;;  %v799_v38 = vadd.f32 %v2088_v34, %v791_v35 }
 0x17a   : > { %v792_v39 = vmul.f32 %v2087_v32, %v784_v37  ;;  %2225 = vmatprep.mubr.msk.f32.mxu0 %vm757_vm1, %v799_v38  ;;  %v926_v32 = vld [vmem:[%s3144_s27 + $0x28] sm:$0xff]  ;;  %v925_v38 = vld [vmem:[%s3144_s27 + $0x20] sm:$0xff] }
 0x17c   : > { %v800_v40 = vadd.f32 %v2088_v34, %v792_v39  ;;  %v928_v39 = vld [vmem:[%s3144_s27 + $0x38] sm:$0xff] }
 0x17e   : > { %2226 = vmatmul.mubr.msk.f32.vlgmr.msra.gmra.mrb[0].mxu0 %vm757_vm1, %v800_v40 }
 0x251   : > { %v2227_v42 = vpop.f32.mrb[0].mxu0 }
 0x252   : > { %v890_v43 = vadd.f32 %v2227_v42, %v2089_v41  ;;  %v884_v44 = vpop.f32.mrb[1].mxu0 }
 0x253   : > { %v885_v45 = vadd.f32 %v2089_v41, %v884_v44 }
 0x254   : > { %897 = vrot.lane.b32.xlu1 %v890_v43, %s2634_s8  ;;  %v914_v12 = vmul.f32 0.35355338, %v890_v43 }
 0x255   : > { %895 = vrot.lane.b32.xlu0 %v885_v45, %s2634_s8  ;;  %v913_v46 = vmul.f32 0.35355338, %v885_v45  ;;  %v2860_v47 = vpack.i.bf16 %v890_v43, %v885_v45  ;;  %s2640_s8 = smov 16  }
 0x257   : > { %2244 = vmatprep.mubr.msk.f32.mxu1 %vm945_vm2, %v913_v46  ;;  %v927_v46 = vld [vmem:[%s3144_s27 + $0x30] sm:$0xff] }
 0x258   : > { %901 = vrot.lane.b32.xlu1 %v885_v45, %s2635_s24 }
 0x259   : > { %907 = vrot.lane.b32.xlu0 %v885_v45, %s2636_s19 }
 0x25c   : > { %903 = vrot.lane.b32.xlu1 %v890_v43, %s2635_s24  ;;  %s2641_s24 = smov 24  }
 0x25d   : > { %2492 = vrot.lane.b32.xlu0 %v2860_v47, %s2637_s18 }
 0x260   : > { %909 = vrot.lane.b32.xlu1 %v890_v43, %s2636_s19 }
 0x2c6   : > { %v898_v48 = vpop.permute.xlu1 %897 }
 0x2c7   : > { %v896_v49 = vpop.permute.xlu0 %895  ;;  %v916_v14 = vmul.f32 0.35355338, %v898_v48 }
 0x2c8   : > { %v2864_v50 = vpack.i.bf16 %v898_v48, %v896_v49  ;;  %v915_v13 = vmul.f32 0.35355338, %v896_v49 }
 0x2ca   : > { %v902_v51 = vpop.permute.xlu1 %901  ;;  %2497 = vrot.lane.b32.xlu1 %v2864_v50, %s2637_s18 }
 0x2cb   : > { %v908_v52 = vpop.permute.xlu0 %907  ;;  %v917_v15 = vmul.f32 0.35355338, %v902_v51 }
 0x2cc   : > { %v919_v17 = vmul.f32 0.35355338, %v908_v52 }
 0x2ce   : > { %v904_v53 = vpop.permute.xlu1 %903 }
 0x2cf   : > { %v2867_v54 = vpack.i.bf16 %v904_v53, %v902_v51  ;;  %v2493_v55 = vpop.permute.xlu0 %2492  ;;  %v918_v16 = vmul.f32 0.35355338, %v904_v53 }
 0x2d0   : > { %v2495_v56 = vunpack.i.h.bf16 %v2493_v55  ;;  %v2494_v57 = vunpack.i.l.bf16 %v2493_v55 }
 0x2d1   : > { %2502 = vrot.lane.b32.xlu0 %v2867_v54, %s2637_s18 }
 0x2d2   : > { %v910_v59 = vpop.permute.xlu1 %909  ;;  %v2367_v60 = vpack.c.bf16 %v2495_v56, %v2494_v57 }
 0x2d3   : > { %v2876_v61 = vpack.i.bf16 %v910_v59, %v908_v52  ;;  %v920_v18 = vmul.f32 0.35355338, %v910_v59 }
 0x2d4   : > { %2369 = vmatprep.subr.msk.bf16.mxu1 %vm2872_vm3, %v2367_v60 }
 0x2d5   : > { %2507 = vrot.lane.b32.xlu1 %v2876_v61, %s2637_s18  ;;  %2372 = vmatpush3.bf16.xpose.msk.msra.mxu1 %vm2872_vm3, %v2367_v60  ;;  %s3145_s18 = scalar_lea.vmem %s3105_s9, %s2761_s13  ;;  %s2128_s13 = sld [smem:[#allocation4 + $0x1]] (!%p2127_p10) }
 0x33c   : > { %v2498_v62 = vpop.permute.xlu1 %2497 }
 0x33d   : > { %v2500_v63 = vunpack.i.h.bf16 %v2498_v62  ;;  %v2499_v0 = vunpack.i.l.bf16 %v2498_v62 }
 0x33f   : > { %v2373_v1 = vpack.c.bf16 %v2500_v63, %v2499_v0 }
 0x341   : > { %2375 = vmatprep.subr.msk.bf16.mxu1 %vm2872_vm3, %v2373_v1 }
 0x342   : > { %2378 = vmatpush3.bf16.xpose.msk.msra.mxu1 %vm2872_vm3, %v2373_v1 }
 0x343   : > { %v2503_v2 = vpop.permute.xlu0 %2502 }
 0x344   : > { %v2505_v3 = vunpack.i.h.bf16 %v2503_v2  ;;  %v2504_v4 = vunpack.i.l.bf16 %v2503_v2 }
 0x346   : > { %v2379_v7 = vpack.c.bf16 %v2505_v3, %v2504_v4 }
 0x347   : > { %v2508_v8 = vpop.permute.xlu1 %2507 }
 0x348   : > { %v2510_v9 = vunpack.i.h.bf16 %v2508_v8  ;;  %v2509_v10 = vunpack.i.l.bf16 %v2508_v8  ;;  %2381 = vmatprep.subr.msk.bf16.mxu1 %vm2872_vm3, %v2379_v7 }
 0x34a   : > { %v2385_v11 = vpack.c.bf16 %v2510_v9, %v2509_v10  ;;  %2384 = vmatpush3.bf16.xpose.msk.msra.mxu1 %vm2872_vm3, %v2379_v7 }
 0x34c   : > { %2387 = vmatprep.subr.msk.bf16.mxu1 %vm2872_vm3, %v2385_v11 }
 0x352   : > { %2390 = vmatpush3.bf16.xpose.msk.msra.mxu1 %vm2872_vm3, %v2385_v11 }
 0x359   : > { %2245 = vmatmul.mubr.msk.f32.vlgmr.msra.gmra.mrb[0].mxu1 %vm945_vm2, %v914_v12 }
 0x35a   : > { %2247 = vmatprep.mubr.msk.f32.mxu1 %vm945_vm2, %v915_v13 }
 0x35d   : > { %2248 = vmatmul.mubr.msk.f32.gmra.mrb[2].mxu1 %vm945_vm2, %v916_v14 }
 0x35e   : > { %2250 = vmatprep.mubr.msk.f32.mxu1 %vm945_vm2, %v917_v15 }
 0x361   : > { %2251 = vmatmul.mubr.msk.f32.gmra.mrb[4].mxu1 %vm945_vm2, %v918_v16 }
 0x362   : > { %2253 = vmatprep.mubr.msk.f32.mxu1 %vm945_vm2, %v919_v17 }
 0x365   : > { %2254 = vmatmul.mubr.msk.f32.gmra.mrb[6].mxu1 %vm945_vm2, %v920_v18 }
 0x42c   : > { %v2246_v21 = vpop.f32.mrb[0].mxu1 }
 0x42d   : > { %v1058_v22 = vadd.f32 %v2246_v21, %v922_v19  ;;  %v1052_v23 = vpop.f32.mrb[1].mxu1 }
 0x42e   : > { %v1053_v24 = vadd.f32 %v1052_v23, %v921_v20 }
 0x42f   : > { %v1095_v26 = vsel %vm1091_vm4, %v1058_v22, -inf }
 0x430   : > { %1096 = vmax.xlane.f32.xlu1 %v1095_v26  ;;  %v2249_v27 = vpop.f32.mrb[2].mxu1  ;;  %v1092_v28 = vsel %vm1091_vm4, %v1053_v24, -inf }
 0x431   : > { %v1068_v29 = vadd.f32 %v2249_v27, %v924_v25  ;;  %v1062_v30 = vpop.f32.mrb[3].mxu1  ;;  %1093 = vmax.xlane.f32.xlu0 %v1092_v28 }
 0x432   : > { %v1063_v34 = vadd.f32 %v1062_v30, %v923_v31 }
 0x433   : > { %v1101_v33 = vsel %vm1091_vm4, %v1068_v29, -inf }
 0x434   : > { %v2252_v35 = vpop.f32.mrb[4].mxu1  ;;  %v1098_v43 = vsel %vm1091_vm4, %v1063_v34, -inf }
 0x435   : > { %v1078_v36 = vadd.f32 %v2252_v35, %v926_v32  ;;  %v1072_v37 = vpop.f32.mrb[5].mxu1  ;;  %1102 = vmax.xlane.f32.xlu0 %v1101_v33 }
 0x436   : > { %v1073_v41 = vadd.f32 %v1072_v37, %v925_v38 }
 0x437   : > { %v1107_v40 = vsel %vm1091_vm4, %v1078_v36, -inf }
 0x438   : > { %1108 = vmax.xlane.f32.xlu1 %v1107_v40  ;;  %v2255_v42 = vpop.f32.mrb[6].mxu1  ;;  %v1104_v51 = vsel %vm1091_vm4, %v1073_v41, -inf }
 0x439   : > { %v1088_v44 = vadd.f32 %v2255_v42, %v928_v39  ;;  %v1082_v45 = vpop.f32.mrb[7].mxu1  ;;  %1099 = vmax.xlane.f32.xlu0 %v1098_v43 }
 0x43a   : > { %v1083_v49 = vadd.f32 %v1082_v45, %v927_v46 }
 0x43b   : > { %v1113_v48 = vsel %vm1091_vm4, %v1088_v44, -inf }
 0x43c   : > { %1114 = vmax.xlane.f32.xlu1 %v1113_v48  ;;  %v1110_v52 = vsel %vm1091_vm4, %v1083_v49, -inf }
 0x43d   : > { %1105 = vmax.xlane.f32.xlu0 %v1104_v51 }
 0x441   : > { %1111 = vmax.xlane.f32.xlu0 %v1110_v52 }
 0x44d   : > { %2517 = vrot.lane.b32.xlu1 %v2864_v50, %s2638_s21 }
 0x457   : > { %2512 = vrot.lane.b32.xlu0 %v2860_v47, %s2638_s21 }
 0x4bd   : > { %v1097_v53 = vpop.xlane.xlu1 %1096 }
 0x4be   : > { %v1117_v55 = vsub.f32 %v1058_v22, %v1097_v53  ;;  %v1094_v56 = vpop.xlane.xlu0 %1093 }
 0x4bf   : > { %v1116_v57 = vsub.f32 %v1053_v24, %v1094_v56 }
 0x4c0   : > { %v1126_v58 = vmul.f32 1.442695, %v1117_v55 }
 0x4c1   : > { %v1124_v59 = vmul.f32 1.442695, %v1116_v57 }
 0x4c2   : > { %2535 = vpow2.f32 %v1126_v58  ;;  %v1103_v60 = vpop.xlane.xlu0 %1102 }
 0x4c3   : > { %2537 = vpow2.f32 %v1124_v59  ;;  %v1119_v62 = vsub.f32 %v1068_v29, %v1103_v60 }
 0x4c5   : > { %v1130_v63 = vmul.f32 1.442695, %v1119_v62  ;;  %v1109_v0 = vpop.xlane.xlu1 %1108 }
 0x4c6   : > { %v1121_v1 = vsub.f32 %v1078_v36, %v1109_v0  ;;  %v1100_v2 = vpop.xlane.xlu0 %1099 }
 0x4c7   : > { %2539 = vpow2.f32 %v1130_v63  ;;  %v1118_v3 = vsub.f32 %v1063_v34, %v1100_v2 }
 0x4c8   : > { %v1134_v50 = vmul.f32 1.442695, %v1121_v1 }
 0x4c9   : > { %v1128_v4 = vmul.f32 1.442695, %v1118_v3  ;;  %v1115_v7 = vpop.xlane.xlu1 %1114 }
 0x4ca   : > { %2541 = vpow2.f32 %v1134_v50  ;;  %v1123_v47 = vsub.f32 %v1088_v44, %v1115_v7  ;;  %v1106_v8 = vpop.xlane.xlu0 %1105 }
 0x4cb   : > { %2543 = vpow2.f32 %v1128_v4  ;;  %v1120_v9 = vsub.f32 %v1073_v41, %v1106_v8 }
 0x4cc   : > { %v2938_v10 = vpop.eup %2535  ;;  %v1138_v11 = vmul.f32 1.442695, %v1123_v47 }
 0x4cd   : > { %v2538_v12 = vpop.eup %2537  ;;  %v1132_v13 = vmul.f32 1.442695, %v1120_v9  ;;  %v1143_v14 = vsel %vm1091_vm4, %v2938_v10, 0.0  ;;  %v2518_v19 = vpop.permute.xlu1 %2517  ;;  %v1365_v9 = vld [vmem:[%s2784_s22] sm:$0xff] }
 0x4ce   : > { %2545 = vpow2.f32 %v1138_v11  ;;  %1144 = vadd.xlane.f32.xlu1 %v1143_v14  ;;  %v1112_v15 = vpop.xlane.xlu0 %1111  ;;  %v1140_v16 = vsel %vm1091_vm4, %v2538_v12, 0.0  ;;  %v2520_v26 = vunpack.i.h.bf16 %v2518_v19  ;;  %v2519_v27 = vunpack.i.l.bf16 %v2518_v19 }
 0x4cf   : > { %2547 = vpow2.f32 %v1132_v13  ;;  %v1122_v17 = vsub.f32 %v1083_v49, %v1112_v15  ;;  %1141 = vadd.xlane.f32.xlu0 %v1140_v16  ;;  %v1368_v13 = vld [vmem:[%s2784_s22 + $0x18] sm:$0xff] }
 0x4d0   : > { %v2395_v33 = vpack.c.bf16 %v2520_v26, %v2519_v27 }
 0x4d1   : > { %v2943_v18 = vpop.eup %2539  ;;  %v1136_v20 = vmul.f32 1.442695, %v1122_v17 }
 0x4d2   : > { %v2513_v21 = vpop.permute.xlu0 %2512  ;;  %v1149_v22 = vsel %vm1091_vm4, %v2943_v18, 0.0 }
 0x4d3   : > { %2549 = vpow2.f32 %v1136_v20  ;;  %v2515_v23 = vunpack.i.h.bf16 %v2513_v21  ;;  %v2514_v24 = vunpack.i.l.bf16 %v2513_v21  ;;  %1150 = vadd.xlane.f32.xlu1 %v1149_v22 }
 0x4d4   : > { %v2947_v25 = vpop.eup %2541 }
 0x4d5   : > { %v2544_v28 = vpop.eup %2543  ;;  %v2391_v29 = vpack.c.bf16 %v2515_v23, %v2514_v24  ;;  %v1155_v30 = vsel %vm1091_vm4, %v2947_v25, 0.0 }
 0x4d6   : > { %v1146_v31 = vsel %vm1091_vm4, %v2544_v28, 0.0 }
 0x4d7   : > { %1156 = vadd.xlane.f32.xlu1 %v1155_v30  ;;  %1147 = vadd.xlane.f32.xlu0 %v1146_v31 }
 0x4d8   : > { %v2952_v32 = vpop.eup %2545  ;;  %2392 = vmatprep.subr.bf16.mxu0 %v2391_v29 }
 0x4d9   : > { %v2548_v34 = vpop.eup %2547  ;;  %2394 = vmatpush3.bf16.msra.mxu0 %v2391_v29  ;;  %v1161_v35 = vsel %vm1091_vm4, %v2952_v32, 0.0 }
 0x4da   : > { %2396 = vmatprep.subr.bf16.mxu0 %v2395_v33  ;;  %v1152_v36 = vsel %vm1091_vm4, %v2548_v34, 0.0 }
 0x4db   : > { %1162 = vadd.xlane.f32.xlu1 %v1161_v35  ;;  %1153 = vadd.xlane.f32.xlu0 %v1152_v36  ;;  %v2118_v36 = vld [vmem:[%s3145_s18] ss:$0 sm:$0xff] }
 0x4dd   : > { %v2550_v37 = vpop.eup %2549  ;;  %2398 = vmatpush3.bf16.msra.mxu0 %v2395_v33 }
 0x4de   : > { %v1158_v38 = vsel %vm1091_vm4, %v2550_v37, 0.0 }
 0x4df   : > { %1159 = vadd.xlane.f32.xlu1 %v1158_v38 }
 0x4f0   : > { %2527 = vrot.lane.b32.xlu1 %v2876_v61, %s2638_s21 }
 0x4f1   : > { %2522 = vrot.lane.b32.xlu0 %v2867_v54, %s2638_s21 }
 0x55b   : > { %v1145_v39 = vpop.xlane.xlu1 %1144 }
 0x55c   : > { %v1142_v40 = vpop.xlane.xlu0 %1141 }
 0x55d   : > { %2551 = vrcp.f32 %v1142_v40 }
 0x55e   : > { %2553 = vrcp.f32 %v1145_v39 }
 0x560   : > { %v1151_v41 = vpop.xlane.xlu1 %1150 }
 0x564   : > { %v1157_v42 = vpop.xlane.xlu1 %1156  ;;  %v1148_v43 = vpop.xlane.xlu0 %1147 }
 0x565   : > { %2555 = vrcp.f32 %v1148_v43 }
 0x566   : > { %2557 = vrcp.f32 %v1151_v41 }
 0x567   : > { %v2552_v44 = vpop.eup %2551 }
 0x568   : > { %v1163_v45 = vpop.xlane.xlu1 %1162  ;;  %v1154_v46 = vpop.xlane.xlu0 %1153  ;;  %v1172_v48 = vmul.f32 %v2552_v44, %v2538_v12  ;;  %v1367_v12 = vld [vmem:[%s2784_s22 + $0x10] sm:$0xff] }
 0x569   : > { %2559 = vrcp.f32 %v1154_v46  ;;  %v2554_v58 = vpop.eup %2553  ;;  %v2411_v14 = vpack.c.bf16 %v1368_v13, %v1367_v12  ;;  %v1613_v12 = vld [vmem:[%s2811_s3] sm:$0xff]  ;;  %v1614_v13 = vld [vmem:[%s2811_s3 + $0x8] sm:$0xff] }
 0x56a   : > { %2272 = vmatprep.mubr.msk.f32.mxu0 %vm1091_vm4, %v1172_v48  ;;  %2561 = vrcp.f32 %v1157_v42  ;;  %v1173_v60 = vmul.f32 %v2554_v58, %v2938_v10  ;;  %v1366_v10 = vld [vmem:[%s2784_s22 + $0x8] sm:$0xff] }
 0x56b   : > { %v2407_v11 = vpack.c.bf16 %v1366_v10, %v1365_v9 }
 0x56c   : > { %v1160_v49 = vpop.xlane.xlu1 %1159  ;;  %v2523_v51 = vpop.permute.xlu0 %2522 }
 0x56d   : > { %v2525_v61 = vunpack.i.h.bf16 %v2523_v51  ;;  %v2524_v52 = vunpack.i.l.bf16 %v2523_v51  ;;  %2563 = vrcp.f32 %v1160_v49 }
 0x56e   : > { %2565 = vrcp.f32 %v1163_v45 }
 0x56f   : > { %v2399_v54 = vpack.c.bf16 %v2525_v61, %v2524_v52  ;;  %v2556_v59 = vpop.eup %2555 }
 0x570   : > { %v2528_v53 = vpop.permute.xlu1 %2527  ;;  %v2558_v62 = vpop.eup %2557  ;;  %v1174_v63 = vmul.f32 %v2556_v59, %v2544_v28 }
 0x571   : > { %v2530_v55 = vunpack.i.h.bf16 %v2528_v53  ;;  %v2529_v56 = vunpack.i.l.bf16 %v2528_v53  ;;  %2400 = vmatprep.subr.bf16.mxu0 %v2399_v54  ;;  %v1175_v1 = vmul.f32 %v2558_v62, %v2943_v18  ;;  %v1506_v53 = vld [vmem:[%s2801_s6 + $0x8] sm:$0xff] }
 0x572   : > { %2402 = vmatpush3.bf16.msra.mxu0 %v2399_v54  ;;  %v1505_v54 = vld [vmem:[%s2801_s6] sm:$0xff] }
 0x573   : > { %v2403_v57 = vpack.c.bf16 %v2530_v55, %v2529_v56  ;;  %v2560_v0 = vpop.eup %2559  ;;  %v2415_v55 = vpack.c.bf16 %v1506_v53, %v1505_v54  ;;  %v1507_v56 = vld [vmem:[%s2801_s6 + $0x10] sm:$0xff] }
 0x574   : > { %v2562_v2 = vpop.eup %2561  ;;  %v1176_v3 = vmul.f32 %v2560_v0, %v2548_v34 }
 0x575   : > { %2404 = vmatprep.subr.bf16.mxu0 %v2403_v57  ;;  %v1177_v4 = vmul.f32 %v2562_v2, %v2947_v25 }
 0x576   : > { %2406 = vmatpush3.bf16.msra.mxu0 %v2403_v57  ;;  %v1508_v57 = vld [vmem:[%s2801_s6 + $0x18] sm:$0xff] }
 0x577   : > { %v2564_v50 = vpop.eup %2563  ;;  %2408 = vmatprep.subr.bf16.mxu0 %v2407_v11  ;;  %v2419_v58 = vpack.c.bf16 %v1508_v57, %v1507_v56 }
 0x578   : > { %v2566_v7 = vpop.eup %2565  ;;  %v1178_v47 = vmul.f32 %v2564_v50, %v2550_v37 }
 0x579   : > { %2273 = vmatmul.mubr.msk.f32.vlgmr.msra.gmra.mrb[2].mxu0 %vm1091_vm4, %v1173_v60  ;;  %v1179_v8 = vmul.f32 %v2566_v7, %v2952_v32 }
 0x57a   : > { %2275 = vmatprep.mubr.msk.f32.mxu0 %vm1091_vm4, %v1174_v63  ;;  %2410 = vmatpush3.bf16.msra.mxu0 %v2407_v11 }
 0x57b   : > { %2412 = vmatprep.subr.bf16.mxu0 %v2411_v14 }
 0x57d   : > { %2276 = vmatmul.mubr.msk.f32.gmra.mrb[4].mxu0 %vm1091_vm4, %v1175_v1 }
 0x57e   : > { %2278 = vmatprep.mubr.msk.f32.mxu0 %vm1091_vm4, %v1176_v3  ;;  %2414 = vmatpush3.bf16.msra.mxu0 %v2411_v14  ;;  %v2119_v3 = vld [vmem:[%s721_s17] ss:$0 sm:$0xff]  ;;  %v2423_v14 = vpack.c.bf16 %v1614_v13, %v1613_v12  ;;  %s3148_s17 = sld [smem:[#allocation17_spill]] (!%p2127_p10) }
 0x57f   : > { %2416 = vmatprep.subr.bf16.mxu0 %v2415_v55 }
 0x580   : > { %2424 = vmatprep.subr.bf16.mxu1 %v2423_v14 }
 0x581   : > { %2279 = vmatmul.mubr.msk.f32.gmra.mrb[6].mxu0 %vm1091_vm4, %v1177_v4  ;;  %v2120_v4 = vld [vmem:[%s724_s30] ss:$0 sm:$0xff]  ;;  %2426 = vmatpush3.bf16.msra.mxu1 %v2423_v14 }
 0x582   : > { %2281 = vmatprep.mubr.msk.f32.mxu0 %vm1091_vm4, %v1178_v47 }
 0x585   : > { %2282 = vmatmul.mubr.msk.f32.gmra.mrb[8].mxu0 %vm1091_vm4, %v1179_v8 }
 0x64c   : > { %v2274_v15 = vpop.f32.mrb[2].mxu0 }
 0x64d   : > { %v1294_v16 = vpop.f32.mrb[3].mxu0 }
 0x650   : > { %v2277_v17 = vpop.f32.mrb[4].mxu0 }
 0x651   : > { %1337 = vrot.lane.b32.xlu1 %v2277_v17, %s2639_s23  ;;  %v1304_v18 = vpop.f32.mrb[5].mxu0 }
 0x652   : > { %1335 = vrot.lane.b32.xlu0 %v1304_v18, %s2639_s23  ;;  %v1617_v18 = vld [vmem:[%s2811_s3 + $0x20] sm:$0xff] }
 0x654   : > { %v2280_v19 = vpop.f32.mrb[6].mxu0 }
 0x655   : > { %1345 = vrot.lane.b32.xlu1 %v2280_v19, %s2640_s8  ;;  %v1314_v20 = vpop.f32.mrb[7].mxu0  ;;  %v1618_v19 = vld [vmem:[%s2811_s3 + $0x28] sm:$0xff] }
 0x656   : > { %1343 = vrot.lane.b32.xlu0 %v1314_v20, %s2640_s8  ;;  %v2431_v20 = vpack.c.bf16 %v1618_v19, %v1617_v18  ;;  %s3147_s8 = sld [smem:[#allocation19_spill]] (!%p2127_p10) }
 0x658   : > { %v2283_v21 = vpop.f32.mrb[8].mxu0 }
 0x659   : > { %1353 = vrot.lane.b32.xlu1 %v2283_v21, %s2641_s24  ;;  %v1324_v22 = vpop.f32.mrb[9].mxu0  ;;  %v1619_v21 = vld [vmem:[%s2811_s3 + $0x30] sm:$0xff] }
 0x65a   : > { %1351 = vrot.lane.b32.xlu0 %v1324_v22, %s2641_s24  ;;  %v1620_v22 = vld [vmem:[%s2811_s3 + $0x38] sm:$0xff] }
 0x65c   : > { %v1841_v14 = vld [vmem:[%s3147_s8] sm:$0xff] (!%p2127_p10)  ;;  %v1844_v18 = vld [vmem:[%s3147_s8 + $0x18] sm:$0xff] (!%p2127_p10) }
 0x6c3   : > { %v1338_v23 = vpop.permute.xlu1 %1337 }
 0x6c4   : > { %v1336_v24 = vpop.permute.xlu0 %1335  ;;  %v1358_v29 = vsel %vm945_vm2, %v2274_v15, %v1338_v23  ;;  %v1615_v15 = vld [vmem:[%s2811_s3 + $0x10] sm:$0xff]  ;;  %v2435_v23 = vpack.c.bf16 %v1620_v22, %v1619_v21 }
 0x6c5   : > { %v1357_v27 = vsel %vm945_vm2, %v1294_v16, %v1336_v24  ;;  %v1616_v16 = vld [vmem:[%s2811_s3 + $0x18] sm:$0xff]  ;;  %v1621_v24 = vld [vmem:[%s2811_s3 + $0x40] sm:$0xff] }
 0x6c6   : > { %v2427_v17 = vpack.c.bf16 %v1616_v16, %v1615_v15  ;;  %v1842_v15 = vld [vmem:[%s3147_s8 + $0x8] sm:$0xff] (!%p2127_p10)  ;;  %v1843_v16 = vld [vmem:[%s3147_s8 + $0x10] sm:$0xff] (!%p2127_p10) }
 0x6c7   : > { %v1346_v25 = vpop.permute.xlu1 %1345  ;;  %v2462_v19 = vpack.c.bf16 (!%p2127_p10), %v1844_v18, %v1843_v16 }
 0x6c8   : > { %v1344_v26 = vpop.permute.xlu0 %1343  ;;  %v1361_v32 = vsel %vm1359_vm5, %v1358_v29, %v1346_v25  ;;  %2428 = vmatprep.subr.bf16.mxu1 %v2427_v17  ;;  %v1622_v25 = vld [vmem:[%s2811_s3 + $0x48] sm:$0xff] }
 0x6c9   : > { %v1360_v30 = vsel %vm1359_vm5, %v1357_v27, %v1344_v26  ;;  %2430 = vmatpush3.bf16.msra.mxu1 %v2427_v17  ;;  %v2439_v26 = vpack.c.bf16 %v1622_v25, %v1621_v24  ;;  %v1623_v27 = vld [vmem:[%s2811_s3 + $0x50] sm:$0xff]  ;;  %v2459_v17 = vpack.c.bf16 (!%p2127_p10), %v1842_v15, %v1841_v14  ;;  %v2130_v24 = vld [vmem:[%s3148_s17] ss:$0 sm:$0xff] (!%p2127_p10) }
 0x6ca   : > { %2432 = vmatprep.subr.bf16.mxu1 %v2431_v20 }
 0x6cb   : > { %v1354_v28 = vpop.permute.xlu1 %1353 }
 0x6cc   : > { %v1352_v31 = vpop.permute.xlu0 %1351  ;;  %v1364_v34 = vsel %vm1362_vm6, %v1361_v32, %v1354_v28  ;;  %v1624_v28 = vld [vmem:[%s2811_s3 + $0x58] sm:$0xff] }
 0x6cd   : > { %v1363_v33 = vsel %vm1362_vm6, %v1360_v30, %v1352_v31  ;;  %2434 = vmatpush3.bf16.msra.mxu1 %v2431_v20  ;;  %v2443_v29 = vpack.c.bf16 %v1624_v28, %v1623_v27  ;;  %v1625_v30 = vld [vmem:[%s2811_s3 + $0x60] sm:$0xff]  ;;  %v1626_v31 = vld [vmem:[%s2811_s3 + $0x68] sm:$0xff] }
 0x6ce   : > { %2292 = vmatprep.mubr.msk.f32.mxu0 %vm757_vm1, %v1363_v33  ;;  %2436 = vmatprep.subr.bf16.mxu1 %v2435_v23  ;;  %v2447_v32 = vpack.c.bf16 %v1626_v31, %v1625_v30  ;;  %v1627_v33 = vld [vmem:[%s2811_s3 + $0x70] sm:$0xff] }
 0x6cf   : > { %2293 = vmatmul.mubr.msk.f32.vlgmr.msra.gmra.mrb[10].mxu0 %vm757_vm1, %v1364_v34  ;;  %v1628_v34 = vld [vmem:[%s2811_s3 + $0x78] sm:$0xff] }
 0x6d0   : > { %2418 = vmatpush3.bf16.msra.mxu0 %v2415_v55  ;;  %v2126_v55 = vld [vmem:[%s740_s29] ss:$0 sm:$0xff]  ;;  %s1732_s29 = sadd.s32 (!%p2127_p10), 8, %s2128_s13 }
 0x6d1   : > { %2420 = vmatprep.subr.bf16.mxu0 %v2419_v58  ;;  %2438 = vmatpush3.bf16.msra.mxu1 %v2435_v23 }
 0x6d2   : > { %2440 = vmatprep.subr.bf16.mxu1 %v2439_v26 }
 0x6d4   : > { %2422 = vmatpush3.bf16.msra.mxu0 %v2419_v58 }
 0x6d5   : > { %2442 = vmatpush3.bf16.msra.mxu1 %v2439_v26 }
 0x6d6   : > { %2444 = vmatprep.subr.bf16.mxu1 %v2443_v29 }
 0x6d9   : > { %2446 = vmatpush3.bf16.msra.mxu1 %v2443_v29 }
 0x6da   : > { %2448 = vmatprep.subr.bf16.mxu1 %v2447_v32 }
 0x6dd   : > { %2450 = vmatpush3.bf16.msra.mxu1 %v2447_v32 }
 0x7a2   : > { %v2294_v35 = vpop.f32.mrb[10].mxu0 }
 0x7a3   : > { %v1451_v37 = vadd.f32 %v2294_v35, %v2829_v6  ;;  %v1441_v38 = vpop.f32.mrb[11].mxu0  ;;  %v2451_v35 = vpack.c.bf16 %v1628_v34, %v1627_v33 }
 0x7a4   : > { %v1450_v39 = vadd.f32 %v1441_v38, %v2827_v5 }
 0x7a5   : > { %v2991_v40 = vadd.f32 %v2118_v36, %v1451_v37  ;;  %2452 = vmatprep.subr.bf16.mxu1 %v2451_v35 }
 0x7a6   : > { %v2993_v41 = vadd.f32 %v2118_v36, %v1450_v39  ;;  %2454 = vmatpush3.bf16.msra.mxu1 %v2451_v35  ;;  %v2121_v36 = vld [vmem:[%s732_s16] ss:$0 sm:$0xff]  ;;  %s3149_s16 = sld [smem:[#allocation18_spill]] (!%p2127_p10) }
 0x7a7   : > { %v1466_v42 = vsel %vm757_vm1, %v2991_v40, 0.0 }
 0x7a8   : > { %1467 = vadd.xlane.f32.xlu1 %v1466_v42  ;;  %v1463_v43 = vsel %vm757_vm1, %v2993_v41, 0.0 }
 0x7a9   : > { %1464 = vadd.xlane.f32.xlu0 %v1463_v43 }
 0x7ac   : > { %v2131_v26 = vld [vmem:[%s3149_s16] ss:$0 sm:$0xff] (!%p2127_p10) }
 0x835   : > { %v1468_v44 = vpop.xlane.xlu1 %1467 }
 0x836   : > { %v1470_v45 = vmul.f32 0.03125, %v1468_v44  ;;  %v1465_v6 = vpop.xlane.xlu0 %1464 }
 0x837   : > { %v1469_v5 = vmul.f32 0.03125, %v1465_v6 }
 0x838   : > { %v1472_v46 = vsub.f32 %v2991_v40, %v1470_v45 }
 0x839   : > { %v1471_v48 = vsub.f32 %v2993_v41, %v1469_v5 }
 0x83a   : > { %v1474_v61 = vmul.f32 %v1472_v46, %v1472_v46 }
 0x83b   : > { %v1473_v49 = vmul.f32 %v1471_v48, %v1471_v48 }
 0x83c   : > { %v1478_v52 = vsel %vm757_vm1, %v1474_v61, 0.0 }
 0x83d   : > { %v1475_v51 = vsel %vm757_vm1, %v1473_v49, 0.0 }
 0x83e   : > { %1476 = vadd.xlane.f32.xlu0 %v1475_v51 }
 0x842   : > { %1479 = vadd.xlane.f32.xlu0 %v1478_v52 }
 0x8cb   : > { %v1477_v59 = vpop.xlane.xlu0 %1476 }
 0x8cc   : > { %v1481_v60 = vmul.f32 0.03125, %v1477_v59 }
 0x8ce   : > { %v1483_v62 = vadd.f32 1e-05, %v1481_v60 }
 0x8cf   : > { %v1480_v63 = vpop.xlane.xlu0 %1479 }
 0x8d0   : > { %2567 = vrsqrt.f32 %v1483_v62  ;;  %v1482_v0 = vmul.f32 0.03125, %v1480_v63  ;;  %v2642_v63 = vmov (!%p2127_p10), 0.0|0.0  }
 0x8d1   : > { %2455 = vmatprep.subr.bf16.mxu0 (!%p2127_p10), %v2642_v63  ;;  %2458 = vmatprep.subr.bf16.mxu1 (!%p2127_p10), %v2642_v63 }
 0x8d2   : > { %v1484_v1 = vadd.f32 1e-05, %v1482_v0  ;;  %v2644_v0 = vmov (!%p2127_p10), 0.0  }
 0x8d4   : > { %2569 = vrsqrt.f32 %v1484_v1 }
 0x8da   : > { %v2568_v2 = vpop.eup %2567 }
 0x8db   : > { %v1487_v50 = vmul.f32 %v2568_v2, %v1471_v48  ;;  %v1727_v2 = vstv (!%p2127_p10), %s1725_s28 }
 0x8dd   : > { %v1495_v7 = vmul.f32 %v2119_v3, %v1487_v50 }
 0x8de   : > { %v2570_v47 = vpop.eup %2569 }
 0x8df   : > { %v1488_v8 = vmul.f32 %v2570_v47, %v1472_v46  ;;  %v1503_v9 = vadd.f32 %v2120_v4, %v1495_v7 }
 0x8e1   : > { %v1496_v10 = vmul.f32 %v2119_v3, %v1488_v8  ;;  %2303 = vmatprep.mubr.msk.f32.mxu0 %vm757_vm1, %v1503_v9  ;;  %v1734_v3 = vstv (!%p2127_p10), %s1732_s29 }
 0x8e3   : > { %v1504_v11 = vadd.f32 %v2120_v4, %v1496_v10 }
 0x8e5   : > { %2304 = vmatmul.mubr.msk.f32.vlgmr.msra.gmra.mrb[12].mxu0 %vm757_vm1, %v1504_v11 }
 0x8e6   : > { %2345 = vmatprep.mubr.msk.f32.mxu0 (!%p2127_p10), %vm2643_vm7, %v2644_v0 }
 0x9b8   : > { %v2305_v37 = vpop.f32.mrb[12].mxu0 }
 0x9b9   : > { %v1594_v38 = vadd.f32 %v2305_v37, %v2121_v36  ;;  %v1588_v39 = vpop.f32.mrb[13].mxu0 }
 0x9ba   : > { %v1589_v42 = vadd.f32 %v2121_v36, %v1588_v39 }
 0x9bb   : > { %v2125_v43 = vmul.f32 -1.702, %v1594_v38 }
 0x9bc   : > { %v2124_v44 = vmul.f32 -1.702, %v1589_v42 }
 0x9bd   : > { %v1603_v45 = vmul.f32 1.442695, %v2125_v43 }
 0x9be   : > { %v1601_v6 = vmul.f32 1.442695, %v2124_v44 }
 0x9bf   : > { %2571 = vpow2.f32 %v1603_v45 }
 0x9c0   : > { %2573 = vpow2.f32 %v1601_v6 }
 0x9c9   : > { %v2572_v5 = vpop.eup %2571 }
 0x9ca   : > { %v2574_v46 = vpop.eup %2573  ;;  %v1606_v48 = vadd.f32 1.0, %v2572_v5 }
 0x9cb   : > { %v1605_v49 = vadd.f32 1.0, %v2574_v46 }
 0x9cc   : > { %2575 = vrcp.f32 %v1606_v48 }
 0x9cd   : > { %2577 = vrcp.f32 %v1605_v49 }
 0x9d6   : > { %v2576_v51 = vpop.eup %2575 }
 0x9d7   : > { %v2578_v61 = vpop.eup %2577  ;;  %v1612_v54 = vmul.f32 %v2576_v51, %v1594_v38 }
 0x9d8   : > { %v1611_v52 = vmul.f32 %v2578_v61, %v1589_v42 }
 0x9da   : > { %2338 = vmatprep.mubr.f32.mxu1 %v1611_v52 }
 0x9db   : > { %2339 = vmatmul.mubr.f32.vlgmr.msra.gmra.mrb[8].mxu1 %v1612_v54 }
 0x9dc   : > { %2356 = vmatprep.mubr.msk.f32.mxu1 (!%p2127_p10), %vm2643_vm7, %v2644_v0  ;;  %2460 = vmatpush3.bf16.msra.mxu1 (!%p2127_p10), %v2459_v17 }
 0x9dd   : > { %2461 = vmatprep.subr.bf16.mxu1 (!%p2127_p10), %v2642_v63 }
 0x9e0   : > { %2463 = vmatpush3.bf16.msra.mxu1 (!%p2127_p10), %v2462_v19 }
 0xaae   : > { %v2340_v53 = vpop.f32.mrb[8].mxu1  ;;  %1720 = sbr.rel (%p2127_p10) target bundleno = 3483 (0xd9b), region = 100 }
 0xaaf   : > { %v1705_v56 = vadd.f32 %v2340_v53, %v2991_v40  ;;  %v1695_v57 = vpop.f32.mrb[9].mxu1  ;;  %v1721_v40 = vlaneseq (!%p2127_p10) }
 0xab0   : > { %v1704_v58 = vadd.f32 %v1695_v57, %v2993_v41 }
 0xab1   : > { %v1714_v59 = vadd.f32 %v2126_v55, %v1705_v56  ;;  %v1722_v41 = vshrl.u32 (!%p2127_p10), %v1721_v40, 7  ;;  %v1724_v1 = vand.u32 (!%p2127_p10), 127, %v1721_v40 }
 0xab2   : > { %v1713_v60 = vadd.f32 %v2126_v55, %v1704_v58 }
 0xab3   : > { %1716 = vst.msk [vmem:[#allocation2 + $0x8] sm:$0xff] %vm757_vm1, %v1714_v59  ;;  %vm1726_vm8 = vcmp.eq.s32.totalorder (!%p2127_p10), %v1722_v41, 0  ;;  %vm1728_vm9 = vcmp.eq.s32.totalorder (!%p2127_p10), %v1724_v1, %v1727_v2  ;;  %vm1733_vm10 = vcmp.eq.s32.totalorder (!%p2127_p10), %v1722_v41, 1  ;;  %vm1735_vm12 = vcmp.eq.s32.totalorder (!%p2127_p10), %v1724_v1, %v1734_v3 }
 0xab4   : > { %1715 = vst.msk [vmem:[#allocation2] sm:$0xff] %vm757_vm1, %v1713_v60  ;;  %v2456_v62 = vpack.c.bf16 (!%p2127_p10), %v1714_v59, %v1713_v60  ;;  %vm1729_vm11 = vmand (!%p2127_p10), %vm1726_vm8, %vm1728_vm9 }
 0xab5   : > { %v1730_v50 = vsel %vm1729_vm11, 1.0, %v2644_v0  ;;  %vm1736_vm13 = vmand %vm1733_vm10, %vm1735_vm12 }
 0xab6   : > { %2457 = vmatpush3.bf16.msra.mxu0 %v2456_v62  ;;  %v1737_v4 = vsel %vm1736_vm13, 1.0, %v1730_v50 }
 0xab9   : > { %2346 = vmatmul.mubr.msk.f32.vlgmr.msra.gmra.mrb[0].mxu0 %vm1359_vm5, %v1737_v4 }
 0xb8c   : > { %v1807_v7 = vpop.f32.mrb[0].mxu0 }
 0xb8d   : > { %v2347_v47 = vpop.f32.mrb[1].mxu0  ;;  %v1814_v8 = vsel %vm1813_vm14, %v1807_v7, 0.0 }
 0xb8e   : > { %1815 = vadd.xlane.f32.xlu0 %v1814_v8 }
 0xc1b   : > { %v1816_v9 = vpop.xlane.xlu0 %1815 }
 0xc1c   : > { %v1817_v10 = vmul.f32 0.03125, %v1816_v9 }
 0xc1e   : > { %v1818_v11 = vsub.f32 %v1807_v7, %v1817_v10 }
 0xc20   : > { %v1819_v12 = vmul.f32 %v1818_v11, %v1818_v11 }
 0xc22   : > { %v1820_v13 = vsel %vm1813_vm14, %v1819_v12, 0.0 }
 0xc23   : > { %1821 = vadd.xlane.f32.xlu0 %v1820_v13 }
 0xcb0   : > { %v1822_v20 = vpop.xlane.xlu0 %1821 }
 0xcb1   : > { %v1823_v21 = vmul.f32 0.03125, %v1822_v20 }
 0xcb3   : > { %v1824_v22 = vadd.f32 1e-05, %v1823_v21 }
 0xcb5   : > { %2579 = vrsqrt.f32 %v1824_v22 }
 0xcbf   : > { %v2580_v23 = vpop.eup %2579 }
 0xcc0   : > { %v1826_v25 = vmul.f32 %v2580_v23, %v1818_v11 }
 0xcc2   : > { %v1833_v27 = vmul.f32 %v2130_v24, %v1826_v25 }
 0xcc4   : > { %v1840_v28 = vadd.f32 %v2131_v26, %v1833_v27 }
 0xcc6   : > { %2357 = vmatmul.mubr.msk.f32.vlgmr.msra.gmra.mrb[0].mxu1 %vm757_vm1, %v1840_v28 }
 0xd99   : > { %v1914_v29 = vpop.f32.mrb[0].mxu1 }
 0xd9a   : > { %1919 = vst.msk [vmem:[#allocation5] sm:$0x3] %vm1918_vm15, %v1914_v29  ;;  %v2358_v30 = vpop.f32.mrb[1].mxu1 }
 0xd9b PF: > { %p2468_p11 = scmp.eq.s32.totalorder %s2755_s2, 1  ;;  %s2645_s3 = smov [#allocation5]  }
 0xd9c   : > { %s1927_s28 = sshll.u32 %s2645_s3, 4  ;;  %s1928_s28 = int_to_ptr.vmem [resolvable:$true] %s1927_s28 }
 0xd9d   : > { %s2593_s13 = scalar_lea.vmem %s1928_s28, 32  ;;  %p2600_p1 = scmp.lt.s32.totalorder %s1928_s28, %s1928_s28 }
 0xd9e   : > { %p2594_p12 = scmp.ne.s32.totalorder %s1928_s28, %s2593_s13  ;;  %p2601_p2 = scmp.lt.s32.totalorder %s2593_s13, %s2593_s13 }
 0xda0   : > { %p2595_p13 = pnand %p2594_p12, %p2468_p11  ;;  %p2602_p3 = por %p2601_p2, %p2600_p1 }
 0xda2   : > { %p2596_p0 = pneg %p2595_p13 }
 0xda4   : > { %p2603_p4 = pnand %p2602_p3, %p2596_p0 }
 0xda6   : > { %2606 = shalt.err (!%p2603_p4)
}
 0xda7   : > { %s3150_s23 = sld [smem:[#allocation20_spill]] }
 0xdad   : > { %s2607_s24 = scalar_lea.hbm %s3150_s23, 32 }
 0xdae   : > { %p2608_p5 = scmp.ne.s32.totalorder %s3150_s23, %s2607_s24  ;;  %p2613_p8 = scmp.lt.u32.totalorder %s2607_s24, %s3150_s23 }
 0xdb0   : > { %p2609_p6 = pnand %p2608_p5, %p2468_p11 }
 0xdb2   : > { %p2610_p7 = pneg %p2609_p6 }
 0xdb4   : > { %p2615_p9 = pnand %p2613_p8, %p2610_p7 }
 0xdb6   : > { %2618 = shalt.err (!%p2615_p9)
}
 0xdb7   : > { %2465 = dma.vmem_to_hbm [thread:$0]  (%p2468_p11), %s1928_s28, 32, %s3150_s23, [#allocation6]  }
 0xdb8   : > { %2626 = dma.done.wait (%p2468_p11), [#allocation6], 32  }
 0xdb9   : > { %2628 = vsyncadd (%p2468_p11), [#allocation6], 4294967264 }
 0xdba PF: > { %s3151_s26 = sld [smem:[#allocation9_spill]] }
 0xdc0   : > { %s36_s22 = sadd.s32 1, %s3151_s26  }
 0xdc1   : > { %p33_p10 = scmp.ge.s32.totalorder %s36_s22, 4  }
 0xdc3   :  { %35 = sbr.rel (!%p33_p10) target bundleno = 25 (0x19), region = 160 }
 0xdca   :  { %1940 = vsyncpa [#allocation6], 1 }
 0xdcb   :  { %1942 = vsyncpa [#allocation6 + $0x1], 1 }

</bundles_post_ra>
